<compile_context>
chip_gen: v5e
topology: v5e:2x2
jax: 0.10.0
libtpu: 0.0.40
codegen_flags: <defaults>
</compile_context>

<pallas_src>
import jax
import jax.numpy as jnp
from jax.experimental import pallas as pl
from jax.experimental.pallas import tpu as pltpu


def clip_embedding_kernel(tok_ref, emb_hbm, pos_ref, out_ref, row_buf, sems):
    # tok_ref : (B*T,) int32 in SMEM (scalar prefetch) -- token ids
    # emb_hbm : (V, D) ref left in HBM (pl.ANY)        -- token-embedding table
    # pos_ref : (T, D) in VMEM                         -- positional embedding
    # out_ref : (BB, T, D) output tile in VMEM
    # row_buf : (BB, T, D) VMEM scratch for gathered embedding rows
    # sems    : (BB, T) DMA semaphores, one per gathered row
    i = pl.program_id(0)
    BB, T, D = row_buf.shape
    V = emb_hbm.shape[0]
    base = i * (BB * T)

    # Issue every row-gather DMA for this batch tile, then wait for all of them
    # (the copies are independent and overlap with each other).
    copies = []
    for r in range(BB * T):
        b_l, t_l = r // T, r % T
        # Clamp to the valid vocab range: PyTorch nn.Embedding raises on OOB ids;
        # here an unchecked OOB HBM DMA must be avoided, so clamp instead.
        tok_id = jnp.clip(tok_ref[base + r], 0, V - 1)
        cp = pltpu.make_async_copy(
            emb_hbm.at[pl.ds(tok_id, 1)],         # (1, D) row in HBM
            row_buf.at[b_l, pl.ds(t_l, 1)],       # (1, D) slot in VMEM scratch
            sems.at[b_l, t_l],
        )
        cp.start()
        copies.append(cp)
    for cp in copies:
        cp.wait()

    # Single dense add + single lane/sublane-dense store for the whole tile.
    out_ref[...] = (row_buf[...] + pos_ref[...][None, :, :]).astype(out_ref.dtype)


def _batch_tile(B, T, D, itemsize, max_bytes=1 << 20, max_rows=256):
    """Largest divisor of B whose (BB, T, D) gather buffer stays small."""
    bb = 1
    for cand in range(1, B + 1):
        if B % cand == 0 and cand * T * D * itemsize <= max_bytes and cand * T <= max_rows:
            bb = cand
    return bb


def clip_embedding(tokens, token_embedding, position_embedding):
    """tokens: (B, T) int; token_embedding: (V, D); position_embedding: (T, D)."""
    B, T = tokens.shape
    V, D = token_embedding.shape
    assert position_embedding.shape == (T, D)

    BB = _batch_tile(B, T, D, token_embedding.dtype.itemsize)
    tok_flat = tokens.astype(jnp.int32).reshape(B * T)

    grid_spec = pltpu.PrefetchScalarGridSpec(
        num_scalar_prefetch=1,                              # token ids -> SMEM
        grid=(B // BB,),
        in_specs=[
            pl.BlockSpec(memory_space=pl.ANY),              # table stays in HBM
            pl.BlockSpec((T, D), lambda i, tok: (0, 0)),    # pos table resident in VMEM
        ],
        out_specs=pl.BlockSpec((BB, T, D), lambda i, tok: (i, 0, 0)),
        scratch_shapes=[
            pltpu.VMEM((BB, T, D), token_embedding.dtype),  # gathered rows
            pltpu.SemaphoreType.DMA((BB, T)),               # one sem per row DMA
        ],
    )

    return pl.pallas_call(
        clip_embedding_kernel,
        out_shape=jax.ShapeDtypeStruct((B, T, D), token_embedding.dtype),
        grid_spec=grid_spec,
        compiler_params=pltpu.CompilerParams(
            dimension_semantics=("parallel",)),             # batch tiles are independent
    )(tok_flat, token_embedding, position_embedding)


if __name__ == "__main__":
    # Small shapes consistent with the module: n_vocab=256, n_embed=128, n_tokens=8, batch=2.
    B, T, V, D = 2, 8, 256, 128

    key = jax.random.PRNGKey(0)
    k_tok, k_emb, k_pos = jax.random.split(key, 3)

    tokens = jax.random.randint(k_tok, (B, T), 0, V, dtype=jnp.int32)
    # nn.Embedding default init ~ N(0, 1).
    token_embedding = jax.random.normal(k_emb, (V, D), dtype=jnp.float32)
    # The PyTorch module initializes position_embedding to zeros; use small random
    # values here (deterministic) so the addition path is actually exercised.
    position_embedding = 0.01 * jax.random.normal(k_pos, (T, D), dtype=jnp.float32)

    out = clip_embedding(tokens, token_embedding, position_embedding)
    out = jax.block_until_ready(out)

    # Pure-JAX reference: x = token_embedding[tokens]; x += position_embedding
    ref = token_embedding[tokens] + position_embedding[None, :, :]

    assert out.shape == (B, T, D)
    assert jnp.allclose(out, ref, atol=1e-5, rtol=1e-5), "mismatch vs reference"
    print("KERNEL_OK")
</pallas_src>

<mosaic_0001>
module attributes {stable_mosaic.version = 11 : i64} {
  func.func @clip_embedding_kernel(%arg0: i32, %arg1: memref<16xi32, #tpu.memory_space<smem>>, %arg2: memref<256x128xf32, #tpu.memory_space<any>>, %arg3: memref<8x128xf32, #tpu.memory_space<vmem>>, %arg4: memref<2x8x128xf32, #tpu.memory_space<vmem>>, %arg5: memref<2x8x128xf32, #tpu.memory_space<vmem>>, %arg6: memref<2x8x!tpu.dma_semaphore, #tpu.memory_space<semaphore_mem>>) attributes {dimension_semantics = [#tpu.dimension_semantics<parallel>], iteration_bounds = array<i64: 1>, scalar_prefetch = 1 : i64, scratch_operands = 2 : i64, tpu.core_type = #tpu.core_type<tc>, window_params = [{}, {pipeline_mode = #tpu.pipeline_mode<synchronous>, transform_indices = @transform_1, window_bounds = array<i64: 8, 128>}, {transform_indices = @transform_2, window_bounds = array<i64: 2, 8, 128>}]} {
    %c16_i32 = arith.constant 16 : i32
    %0 = arith.muli %arg0, %c16_i32 : i32
    %c0_i32 = arith.constant 0 : i32
    %1 = arith.addi %0, %c0_i32 : i32
    %2 = arith.index_cast %1 : i32 to index
    %3 = memref.load %arg1[%2] : memref<16xi32, #tpu.memory_space<smem>>
    %c0_i32_0 = arith.constant 0 : i32
    %c255_i32 = arith.constant 255 : i32
    %4 = arith.maxsi %c0_i32_0, %3 : i32
    %5 = arith.minsi %c255_i32, %4 : i32
    %c0_i32_1 = arith.constant 0 : i32
    %c0_i32_2 = arith.constant 0 : i32
    %c0_i32_3 = arith.constant 0 : i32
    %c0_i32_4 = arith.constant 0 : i32
    %6 = tpu.memref_slice %arg2[%5, %c0_i32_4] : memref<256x128xf32, #tpu.memory_space<any>> -> memref<1x128xf32, #tpu.memory_space<any>>
    %c0_i32_5 = arith.constant 0 : i32
    %c0_i32_6 = arith.constant 0 : i32
    %7 = tpu.memref_slice %arg5[%c0_i32_1, %c0_i32_5, %c0_i32_6] : memref<2x8x128xf32, #tpu.memory_space<vmem>> -> memref<1x1x128xf32, #tpu.memory_space<vmem>>
    %8 = tpu.memref_squeeze %7 : memref<1x1x128xf32, #tpu.memory_space<vmem>> -> memref<1x128xf32, #tpu.memory_space<vmem>>
    %9 = tpu.memref_slice %arg6[%c0_i32_2, %c0_i32_3] : memref<2x8x!tpu.dma_semaphore, #tpu.memory_space<semaphore_mem>> -> memref<1x1x!tpu.dma_semaphore, #tpu.memory_space<semaphore_mem>>
    %10 = tpu.memref_squeeze %9 : memref<1x1x!tpu.dma_semaphore, #tpu.memory_space<semaphore_mem>> -> memref<!tpu.dma_semaphore, #tpu.memory_space<semaphore_mem>>
    tpu.enqueue_dma source(%6 : memref<1x128xf32, #tpu.memory_space<any>>) target(%8 : memref<1x128xf32, #tpu.memory_space<vmem>>) target_semaphore(%10 : memref<!tpu.dma_semaphore, #tpu.memory_space<semaphore_mem>>)
    %c1_i32 = arith.constant 1 : i32
    %11 = arith.addi %0, %c1_i32 : i32
    %12 = arith.index_cast %11 : i32 to index
    %13 = memref.load %arg1[%12] : memref<16xi32, #tpu.memory_space<smem>>
    %c0_i32_7 = arith.constant 0 : i32
    %c255_i32_8 = arith.constant 255 : i32
    %14 = arith.maxsi %c0_i32_7, %13 : i32
    %15 = arith.minsi %c255_i32_8, %14 : i32
    %c0_i32_9 = arith.constant 0 : i32
    %c0_i32_10 = arith.constant 0 : i32
    %c1_i32_11 = arith.constant 1 : i32
    %c0_i32_12 = arith.constant 0 : i32
    %16 = tpu.memref_slice %arg2[%15, %c0_i32_12] : memref<256x128xf32, #tpu.memory_space<any>> -> memref<1x128xf32, #tpu.memory_space<any>>
    %c1_i32_13 = arith.constant 1 : i32
    %c0_i32_14 = arith.constant 0 : i32
    %17 = tpu.memref_slice %arg5[%c0_i32_9, %c1_i32_13, %c0_i32_14] : memref<2x8x128xf32, #tpu.memory_space<vmem>> -> memref<1x1x128xf32, #tpu.memory_space<vmem>>
    %18 = tpu.memref_squeeze %17 : memref<1x1x128xf32, #tpu.memory_space<vmem>> -> memref<1x128xf32, #tpu.memory_space<vmem>>
    %19 = tpu.memref_slice %arg6[%c0_i32_10, %c1_i32_11] : memref<2x8x!tpu.dma_semaphore, #tpu.memory_space<semaphore_mem>> -> memref<1x1x!tpu.dma_semaphore, #tpu.memory_space<semaphore_mem>>
    %20 = tpu.memref_squeeze %19 : memref<1x1x!tpu.dma_semaphore, #tpu.memory_space<semaphore_mem>> -> memref<!tpu.dma_semaphore, #tpu.memory_space<semaphore_mem>>
    tpu.enqueue_dma source(%16 : memref<1x128xf32, #tpu.memory_space<any>>) target(%18 : memref<1x128xf32, #tpu.memory_space<vmem>>) target_semaphore(%20 : memref<!tpu.dma_semaphore, #tpu.memory_space<semaphore_mem>>)
    %c2_i32 = arith.constant 2 : i32
    %21 = arith.addi %0, %c2_i32 : i32
    %22 = arith.index_cast %21 : i32 to index
    %23 = memref.load %arg1[%22] : memref<16xi32, #tpu.memory_space<smem>>
    %c0_i32_15 = arith.constant 0 : i32
    %c255_i32_16 = arith.constant 255 : i32
    %24 = arith.maxsi %c0_i32_15, %23 : i32
    %25 = arith.minsi %c255_i32_16, %24 : i32
    %c0_i32_17 = arith.constant 0 : i32
    %c0_i32_18 = arith.constant 0 : i32
    %c2_i32_19 = arith.constant 2 : i32
    %c0_i32_20 = arith.constant 0 : i32
    %26 = tpu.memref_slice %arg2[%25, %c0_i32_20] : memref<256x128xf32, #tpu.memory_space<any>> -> memref<1x128xf32, #tpu.memory_space<any>>
    %c2_i32_21 = arith.constant 2 : i32
    %c0_i32_22 = arith.constant 0 : i32
    %27 = tpu.memref_slice %arg5[%c0_i32_17, %c2_i32_21, %c0_i32_22] : memref<2x8x128xf32, #tpu.memory_space<vmem>> -> memref<1x1x128xf32, #tpu.memory_space<vmem>>
    %28 = tpu.memref_squeeze %27 : memref<1x1x128xf32, #tpu.memory_space<vmem>> -> memref<1x128xf32, #tpu.memory_space<vmem>>
    %29 = tpu.memref_slice %arg6[%c0_i32_18, %c2_i32_19] : memref<2x8x!tpu.dma_semaphore, #tpu.memory_space<semaphore_mem>> -> memref<1x1x!tpu.dma_semaphore, #tpu.memory_space<semaphore_mem>>
    %30 = tpu.memref_squeeze %29 : memref<1x1x!tpu.dma_semaphore, #tpu.memory_space<semaphore_mem>> -> memref<!tpu.dma_semaphore, #tpu.memory_space<semaphore_mem>>
    tpu.enqueue_dma source(%26 : memref<1x128xf32, #tpu.memory_space<any>>) target(%28 : memref<1x128xf32, #tpu.memory_space<vmem>>) target_semaphore(%30 : memref<!tpu.dma_semaphore, #tpu.memory_space<semaphore_mem>>)
    %c3_i32 = arith.constant 3 : i32
    %31 = arith.addi %0, %c3_i32 : i32
    %32 = arith.index_cast %31 : i32 to index
    %33 = memref.load %arg1[%32] : memref<16xi32, #tpu.memory_space<smem>>
    %c0_i32_23 = arith.constant 0 : i32
    %c255_i32_24 = arith.constant 255 : i32
    %34 = arith.maxsi %c0_i32_23, %33 : i32
    %35 = arith.minsi %c255_i32_24, %34 : i32
    %c0_i32_25 = arith.constant 0 : i32
    %c0_i32_26 = arith.constant 0 : i32
    %c3_i32_27 = arith.constant 3 : i32
    %c0_i32_28 = arith.constant 0 : i32
    %36 = tpu.memref_slice %arg2[%35, %c0_i32_28] : memref<256x128xf32, #tpu.memory_space<any>> -> memref<1x128xf32, #tpu.memory_space<any>>
    %c3_i32_29 = arith.constant 3 : i32
    %c0_i32_30 = arith.constant 0 : i32
    %37 = tpu.memref_slice %arg5[%c0_i32_25, %c3_i32_29, %c0_i32_30] : memref<2x8x128xf32, #tpu.memory_space<vmem>> -> memref<1x1x128xf32, #tpu.memory_space<vmem>>
    %38 = tpu.memref_squeeze %37 : memref<1x1x128xf32, #tpu.memory_space<vmem>> -> memref<1x128xf32, #tpu.memory_space<vmem>>
    %39 = tpu.memref_slice %arg6[%c0_i32_26, %c3_i32_27] : memref<2x8x!tpu.dma_semaphore, #tpu.memory_space<semaphore_mem>> -> memref<1x1x!tpu.dma_semaphore, #tpu.memory_space<semaphore_mem>>
    %40 = tpu.memref_squeeze %39 : memref<1x1x!tpu.dma_semaphore, #tpu.memory_space<semaphore_mem>> -> memref<!tpu.dma_semaphore, #tpu.memory_space<semaphore_mem>>
    tpu.enqueue_dma source(%36 : memref<1x128xf32, #tpu.memory_space<any>>) target(%38 : memref<1x128xf32, #tpu.memory_space<vmem>>) target_semaphore(%40 : memref<!tpu.dma_semaphore, #tpu.memory_space<semaphore_mem>>)
    %c4_i32 = arith.constant 4 : i32
    %41 = arith.addi %0, %c4_i32 : i32
    %42 = arith.index_cast %41 : i32 to index
    %43 = memref.load %arg1[%42] : memref<16xi32, #tpu.memory_space<smem>>
    %c0_i32_31 = arith.constant 0 : i32
    %c255_i32_32 = arith.constant 255 : i32
    %44 = arith.maxsi %c0_i32_31, %43 : i32
    %45 = arith.minsi %c255_i32_32, %44 : i32
    %c0_i32_33 = arith.constant 0 : i32
    %c0_i32_34 = arith.constant 0 : i32
    %c4_i32_35 = arith.constant 4 : i32
    %c0_i32_36 = arith.constant 0 : i32
    %46 = tpu.memref_slice %arg2[%45, %c0_i32_36] : memref<256x128xf32, #tpu.memory_space<any>> -> memref<1x128xf32, #tpu.memory_space<any>>
    %c4_i32_37 = arith.constant 4 : i32
    %c0_i32_38 = arith.constant 0 : i32
    %47 = tpu.memref_slice %arg5[%c0_i32_33, %c4_i32_37, %c0_i32_38] : memref<2x8x128xf32, #tpu.memory_space<vmem>> -> memref<1x1x128xf32, #tpu.memory_space<vmem>>
    %48 = tpu.memref_squeeze %47 : memref<1x1x128xf32, #tpu.memory_space<vmem>> -> memref<1x128xf32, #tpu.memory_space<vmem>>
    %49 = tpu.memref_slice %arg6[%c0_i32_34, %c4_i32_35] : memref<2x8x!tpu.dma_semaphore, #tpu.memory_space<semaphore_mem>> -> memref<1x1x!tpu.dma_semaphore, #tpu.memory_space<semaphore_mem>>
    %50 = tpu.memref_squeeze %49 : memref<1x1x!tpu.dma_semaphore, #tpu.memory_space<semaphore_mem>> -> memref<!tpu.dma_semaphore, #tpu.memory_space<semaphore_mem>>
    tpu.enqueue_dma source(%46 : memref<1x128xf32, #tpu.memory_space<any>>) target(%48 : memref<1x128xf32, #tpu.memory_space<vmem>>) target_semaphore(%50 : memref<!tpu.dma_semaphore, #tpu.memory_space<semaphore_mem>>)
    %c5_i32 = arith.constant 5 : i32
    %51 = arith.addi %0, %c5_i32 : i32
    %52 = arith.index_cast %51 : i32 to index
    %53 = memref.load %arg1[%52] : memref<16xi32, #tpu.memory_space<smem>>
    %c0_i32_39 = arith.constant 0 : i32
    %c255_i32_40 = arith.constant 255 : i32
    %54 = arith.maxsi %c0_i32_39, %53 : i32
    %55 = arith.minsi %c255_i32_40, %54 : i32
    %c0_i32_41 = arith.constant 0 : i32
    %c0_i32_42 = arith.constant 0 : i32
    %c5_i32_43 = arith.constant 5 : i32
    %c0_i32_44 = arith.constant 0 : i32
    %56 = tpu.memref_slice %arg2[%55, %c0_i32_44] : memref<256x128xf32, #tpu.memory_space<any>> -> memref<1x128xf32, #tpu.memory_space<any>>
    %c5_i32_45 = arith.constant 5 : i32
    %c0_i32_46 = arith.constant 0 : i32
    %57 = tpu.memref_slice %arg5[%c0_i32_41, %c5_i32_45, %c0_i32_46] : memref<2x8x128xf32, #tpu.memory_space<vmem>> -> memref<1x1x128xf32, #tpu.memory_space<vmem>>
    %58 = tpu.memref_squeeze %57 : memref<1x1x128xf32, #tpu.memory_space<vmem>> -> memref<1x128xf32, #tpu.memory_space<vmem>>
    %59 = tpu.memref_slice %arg6[%c0_i32_42, %c5_i32_43] : memref<2x8x!tpu.dma_semaphore, #tpu.memory_space<semaphore_mem>> -> memref<1x1x!tpu.dma_semaphore, #tpu.memory_space<semaphore_mem>>
    %60 = tpu.memref_squeeze %59 : memref<1x1x!tpu.dma_semaphore, #tpu.memory_space<semaphore_mem>> -> memref<!tpu.dma_semaphore, #tpu.memory_space<semaphore_mem>>
    tpu.enqueue_dma source(%56 : memref<1x128xf32, #tpu.memory_space<any>>) target(%58 : memref<1x128xf32, #tpu.memory_space<vmem>>) target_semaphore(%60 : memref<!tpu.dma_semaphore, #tpu.memory_space<semaphore_mem>>)
    %c6_i32 = arith.constant 6 : i32
    %61 = arith.addi %0, %c6_i32 : i32
    %62 = arith.index_cast %61 : i32 to index
    %63 = memref.load %arg1[%62] : memref<16xi32, #tpu.memory_space<smem>>
    %c0_i32_47 = arith.constant 0 : i32
    %c255_i32_48 = arith.constant 255 : i32
    %64 = arith.maxsi %c0_i32_47, %63 : i32
    %65 = arith.minsi %c255_i32_48, %64 : i32
    %c0_i32_49 = arith.constant 0 : i32
    %c0_i32_50 = arith.constant 0 : i32
    %c6_i32_51 = arith.constant 6 : i32
    %c0_i32_52 = arith.constant 0 : i32
    %66 = tpu.memref_slice %arg2[%65, %c0_i32_52] : memref<256x128xf32, #tpu.memory_space<any>> -> memref<1x128xf32, #tpu.memory_space<any>>
    %c6_i32_53 = arith.constant 6 : i32
    %c0_i32_54 = arith.constant 0 : i32
    %67 = tpu.memref_slice %arg5[%c0_i32_49, %c6_i32_53, %c0_i32_54] : memref<2x8x128xf32, #tpu.memory_space<vmem>> -> memref<1x1x128xf32, #tpu.memory_space<vmem>>
    %68 = tpu.memref_squeeze %67 : memref<1x1x128xf32, #tpu.memory_space<vmem>> -> memref<1x128xf32, #tpu.memory_space<vmem>>
    %69 = tpu.memref_slice %arg6[%c0_i32_50, %c6_i32_51] : memref<2x8x!tpu.dma_semaphore, #tpu.memory_space<semaphore_mem>> -> memref<1x1x!tpu.dma_semaphore, #tpu.memory_space<semaphore_mem>>
    %70 = tpu.memref_squeeze %69 : memref<1x1x!tpu.dma_semaphore, #tpu.memory_space<semaphore_mem>> -> memref<!tpu.dma_semaphore, #tpu.memory_space<semaphore_mem>>
    tpu.enqueue_dma source(%66 : memref<1x128xf32, #tpu.memory_space<any>>) target(%68 : memref<1x128xf32, #tpu.memory_space<vmem>>) target_semaphore(%70 : memref<!tpu.dma_semaphore, #tpu.memory_space<semaphore_mem>>)
    %c7_i32 = arith.constant 7 : i32
    %71 = arith.addi %0, %c7_i32 : i32
    %72 = arith.index_cast %71 : i32 to index
    %73 = memref.load %arg1[%72] : memref<16xi32, #tpu.memory_space<smem>>
    %c0_i32_55 = arith.constant 0 : i32
    %c255_i32_56 = arith.constant 255 : i32
    %74 = arith.maxsi %c0_i32_55, %73 : i32
    %75 = arith.minsi %c255_i32_56, %74 : i32
    %c0_i32_57 = arith.constant 0 : i32
    %c0_i32_58 = arith.constant 0 : i32
    %c7_i32_59 = arith.constant 7 : i32
    %c0_i32_60 = arith.constant 0 : i32
    %76 = tpu.memref_slice %arg2[%75, %c0_i32_60] : memref<256x128xf32, #tpu.memory_space<any>> -> memref<1x128xf32, #tpu.memory_space<any>>
    %c7_i32_61 = arith.constant 7 : i32
    %c0_i32_62 = arith.constant 0 : i32
    %77 = tpu.memref_slice %arg5[%c0_i32_57, %c7_i32_61, %c0_i32_62] : memref<2x8x128xf32, #tpu.memory_space<vmem>> -> memref<1x1x128xf32, #tpu.memory_space<vmem>>
    %78 = tpu.memref_squeeze %77 : memref<1x1x128xf32, #tpu.memory_space<vmem>> -> memref<1x128xf32, #tpu.memory_space<vmem>>
    %79 = tpu.memref_slice %arg6[%c0_i32_58, %c7_i32_59] : memref<2x8x!tpu.dma_semaphore, #tpu.memory_space<semaphore_mem>> -> memref<1x1x!tpu.dma_semaphore, #tpu.memory_space<semaphore_mem>>
    %80 = tpu.memref_squeeze %79 : memref<1x1x!tpu.dma_semaphore, #tpu.memory_space<semaphore_mem>> -> memref<!tpu.dma_semaphore, #tpu.memory_space<semaphore_mem>>
    tpu.enqueue_dma source(%76 : memref<1x128xf32, #tpu.memory_space<any>>) target(%78 : memref<1x128xf32, #tpu.memory_space<vmem>>) target_semaphore(%80 : memref<!tpu.dma_semaphore, #tpu.memory_space<semaphore_mem>>)
    %c8_i32 = arith.constant 8 : i32
    %81 = arith.addi %0, %c8_i32 : i32
    %82 = arith.index_cast %81 : i32 to index
    %83 = memref.load %arg1[%82] : memref<16xi32, #tpu.memory_space<smem>>
    %c0_i32_63 = arith.constant 0 : i32
    %c255_i32_64 = arith.constant 255 : i32
    %84 = arith.maxsi %c0_i32_63, %83 : i32
    %85 = arith.minsi %c255_i32_64, %84 : i32
    %c1_i32_65 = arith.constant 1 : i32
    %c1_i32_66 = arith.constant 1 : i32
    %c0_i32_67 = arith.constant 0 : i32
    %c0_i32_68 = arith.constant 0 : i32
    %86 = tpu.memref_slice %arg2[%85, %c0_i32_68] : memref<256x128xf32, #tpu.memory_space<any>> -> memref<1x128xf32, #tpu.memory_space<any>>
    %c0_i32_69 = arith.constant 0 : i32
    %c0_i32_70 = arith.constant 0 : i32
    %87 = tpu.memref_slice %arg5[%c1_i32_65, %c0_i32_69, %c0_i32_70] : memref<2x8x128xf32, #tpu.memory_space<vmem>> -> memref<1x1x128xf32, #tpu.memory_space<vmem>>
    %88 = tpu.memref_squeeze %87 : memref<1x1x128xf32, #tpu.memory_space<vmem>> -> memref<1x128xf32, #tpu.memory_space<vmem>>
    %89 = tpu.memref_slice %arg6[%c1_i32_66, %c0_i32_67] : memref<2x8x!tpu.dma_semaphore, #tpu.memory_space<semaphore_mem>> -> memref<1x1x!tpu.dma_semaphore, #tpu.memory_space<semaphore_mem>>
    %90 = tpu.memref_squeeze %89 : memref<1x1x!tpu.dma_semaphore, #tpu.memory_space<semaphore_mem>> -> memref<!tpu.dma_semaphore, #tpu.memory_space<semaphore_mem>>
    tpu.enqueue_dma source(%86 : memref<1x128xf32, #tpu.memory_space<any>>) target(%88 : memref<1x128xf32, #tpu.memory_space<vmem>>) target_semaphore(%90 : memref<!tpu.dma_semaphore, #tpu.memory_space<semaphore_mem>>)
    %c9_i32 = arith.constant 9 : i32
    %91 = arith.addi %0, %c9_i32 : i32
    %92 = arith.index_cast %91 : i32 to index
    %93 = memref.load %arg1[%92] : memref<16xi32, #tpu.memory_space<smem>>
    %c0_i32_71 = arith.constant 0 : i32
    %c255_i32_72 = arith.constant 255 : i32
    %94 = arith.maxsi %c0_i32_71, %93 : i32
    %95 = arith.minsi %c255_i32_72, %94 : i32
    %c1_i32_73 = arith.constant 1 : i32
    %c1_i32_74 = arith.constant 1 : i32
    %c1_i32_75 = arith.constant 1 : i32
    %c0_i32_76 = arith.constant 0 : i32
    %96 = tpu.memref_slice %arg2[%95, %c0_i32_76] : memref<256x128xf32, #tpu.memory_space<any>> -> memref<1x128xf32, #tpu.memory_space<any>>
    %c1_i32_77 = arith.constant 1 : i32
    %c0_i32_78 = arith.constant 0 : i32
    %97 = tpu.memref_slice %arg5[%c1_i32_73, %c1_i32_77, %c0_i32_78] : memref<2x8x128xf32, #tpu.memory_space<vmem>> -> memref<1x1x128xf32, #tpu.memory_space<vmem>>
    %98 = tpu.memref_squeeze %97 : memref<1x1x128xf32, #tpu.memory_space<vmem>> -> memref<1x128xf32, #tpu.memory_space<vmem>>
    %99 = tpu.memref_slice %arg6[%c1_i32_74, %c1_i32_75] : memref<2x8x!tpu.dma_semaphore, #tpu.memory_space<semaphore_mem>> -> memref<1x1x!tpu.dma_semaphore, #tpu.memory_space<semaphore_mem>>
    %100 = tpu.memref_squeeze %99 : memref<1x1x!tpu.dma_semaphore, #tpu.memory_space<semaphore_mem>> -> memref<!tpu.dma_semaphore, #tpu.memory_space<semaphore_mem>>
    tpu.enqueue_dma source(%96 : memref<1x128xf32, #tpu.memory_space<any>>) target(%98 : memref<1x128xf32, #tpu.memory_space<vmem>>) target_semaphore(%100 : memref<!tpu.dma_semaphore, #tpu.memory_space<semaphore_mem>>)
    %c10_i32 = arith.constant 10 : i32
    %101 = arith.addi %0, %c10_i32 : i32
    %102 = arith.index_cast %101 : i32 to index
    %103 = memref.load %arg1[%102] : memref<16xi32, #tpu.memory_space<smem>>
    %c0_i32_79 = arith.constant 0 : i32
    %c255_i32_80 = arith.constant 255 : i32
    %104 = arith.maxsi %c0_i32_79, %103 : i32
    %105 = arith.minsi %c255_i32_80, %104 : i32
    %c1_i32_81 = arith.constant 1 : i32
    %c1_i32_82 = arith.constant 1 : i32
    %c2_i32_83 = arith.constant 2 : i32
    %c0_i32_84 = arith.constant 0 : i32
    %106 = tpu.memref_slice %arg2[%105, %c0_i32_84] : memref<256x128xf32, #tpu.memory_space<any>> -> memref<1x128xf32, #tpu.memory_space<any>>
    %c2_i32_85 = arith.constant 2 : i32
    %c0_i32_86 = arith.constant 0 : i32
    %107 = tpu.memref_slice %arg5[%c1_i32_81, %c2_i32_85, %c0_i32_86] : memref<2x8x128xf32, #tpu.memory_space<vmem>> -> memref<1x1x128xf32, #tpu.memory_space<vmem>>
    %108 = tpu.memref_squeeze %107 : memref<1x1x128xf32, #tpu.memory_space<vmem>> -> memref<1x128xf32, #tpu.memory_space<vmem>>
    %109 = tpu.memref_slice %arg6[%c1_i32_82, %c2_i32_83] : memref<2x8x!tpu.dma_semaphore, #tpu.memory_space<semaphore_mem>> -> memref<1x1x!tpu.dma_semaphore, #tpu.memory_space<semaphore_mem>>
    %110 = tpu.memref_squeeze %109 : memref<1x1x!tpu.dma_semaphore, #tpu.memory_space<semaphore_mem>> -> memref<!tpu.dma_semaphore, #tpu.memory_space<semaphore_mem>>
    tpu.enqueue_dma source(%106 : memref<1x128xf32, #tpu.memory_space<any>>) target(%108 : memref<1x128xf32, #tpu.memory_space<vmem>>) target_semaphore(%110 : memref<!tpu.dma_semaphore, #tpu.memory_space<semaphore_mem>>)
    %c11_i32 = arith.constant 11 : i32
    %111 = arith.addi %0, %c11_i32 : i32
    %112 = arith.index_cast %111 : i32 to index
    %113 = memref.load %arg1[%112] : memref<16xi32, #tpu.memory_space<smem>>
    %c0_i32_87 = arith.constant 0 : i32
    %c255_i32_88 = arith.constant 255 : i32
    %114 = arith.maxsi %c0_i32_87, %113 : i32
    %115 = arith.minsi %c255_i32_88, %114 : i32
    %c1_i32_89 = arith.constant 1 : i32
    %c1_i32_90 = arith.constant 1 : i32
    %c3_i32_91 = arith.constant 3 : i32
    %c0_i32_92 = arith.constant 0 : i32
    %116 = tpu.memref_slice %arg2[%115, %c0_i32_92] : memref<256x128xf32, #tpu.memory_space<any>> -> memref<1x128xf32, #tpu.memory_space<any>>
    %c3_i32_93 = arith.constant 3 : i32
    %c0_i32_94 = arith.constant 0 : i32
    %117 = tpu.memref_slice %arg5[%c1_i32_89, %c3_i32_93, %c0_i32_94] : memref<2x8x128xf32, #tpu.memory_space<vmem>> -> memref<1x1x128xf32, #tpu.memory_space<vmem>>
    %118 = tpu.memref_squeeze %117 : memref<1x1x128xf32, #tpu.memory_space<vmem>> -> memref<1x128xf32, #tpu.memory_space<vmem>>
    %119 = tpu.memref_slice %arg6[%c1_i32_90, %c3_i32_91] : memref<2x8x!tpu.dma_semaphore, #tpu.memory_space<semaphore_mem>> -> memref<1x1x!tpu.dma_semaphore, #tpu.memory_space<semaphore_mem>>
    %120 = tpu.memref_squeeze %119 : memref<1x1x!tpu.dma_semaphore, #tpu.memory_space<semaphore_mem>> -> memref<!tpu.dma_semaphore, #tpu.memory_space<semaphore_mem>>
    tpu.enqueue_dma source(%116 : memref<1x128xf32, #tpu.memory_space<any>>) target(%118 : memref<1x128xf32, #tpu.memory_space<vmem>>) target_semaphore(%120 : memref<!tpu.dma_semaphore, #tpu.memory_space<semaphore_mem>>)
    %c12_i32 = arith.constant 12 : i32
    %121 = arith.addi %0, %c12_i32 : i32
    %122 = arith.index_cast %121 : i32 to index
    %123 = memref.load %arg1[%122] : memref<16xi32, #tpu.memory_space<smem>>
    %c0_i32_95 = arith.constant 0 : i32
    %c255_i32_96 = arith.constant 255 : i32
    %124 = arith.maxsi %c0_i32_95, %123 : i32
    %125 = arith.minsi %c255_i32_96, %124 : i32
    %c1_i32_97 = arith.constant 1 : i32
    %c1_i32_98 = arith.constant 1 : i32
    %c4_i32_99 = arith.constant 4 : i32
    %c0_i32_100 = arith.constant 0 : i32
    %126 = tpu.memref_slice %arg2[%125, %c0_i32_100] : memref<256x128xf32, #tpu.memory_space<any>> -> memref<1x128xf32, #tpu.memory_space<any>>
    %c4_i32_101 = arith.constant 4 : i32
    %c0_i32_102 = arith.constant 0 : i32
    %127 = tpu.memref_slice %arg5[%c1_i32_97, %c4_i32_101, %c0_i32_102] : memref<2x8x128xf32, #tpu.memory_space<vmem>> -> memref<1x1x128xf32, #tpu.memory_space<vmem>>
    %128 = tpu.memref_squeeze %127 : memref<1x1x128xf32, #tpu.memory_space<vmem>> -> memref<1x128xf32, #tpu.memory_space<vmem>>
    %129 = tpu.memref_slice %arg6[%c1_i32_98, %c4_i32_99] : memref<2x8x!tpu.dma_semaphore, #tpu.memory_space<semaphore_mem>> -> memref<1x1x!tpu.dma_semaphore, #tpu.memory_space<semaphore_mem>>
    %130 = tpu.memref_squeeze %129 : memref<1x1x!tpu.dma_semaphore, #tpu.memory_space<semaphore_mem>> -> memref<!tpu.dma_semaphore, #tpu.memory_space<semaphore_mem>>
    tpu.enqueue_dma source(%126 : memref<1x128xf32, #tpu.memory_space<any>>) target(%128 : memref<1x128xf32, #tpu.memory_space<vmem>>) target_semaphore(%130 : memref<!tpu.dma_semaphore, #tpu.memory_space<semaphore_mem>>)
    %c13_i32 = arith.constant 13 : i32
    %131 = arith.addi %0, %c13_i32 : i32
    %132 = arith.index_cast %131 : i32 to index
    %133 = memref.load %arg1[%132] : memref<16xi32, #tpu.memory_space<smem>>
    %c0_i32_103 = arith.constant 0 : i32
    %c255_i32_104 = arith.constant 255 : i32
    %134 = arith.maxsi %c0_i32_103, %133 : i32
    %135 = arith.minsi %c255_i32_104, %134 : i32
    %c1_i32_105 = arith.constant 1 : i32
    %c1_i32_106 = arith.constant 1 : i32
    %c5_i32_107 = arith.constant 5 : i32
    %c0_i32_108 = arith.constant 0 : i32
    %136 = tpu.memref_slice %arg2[%135, %c0_i32_108] : memref<256x128xf32, #tpu.memory_space<any>> -> memref<1x128xf32, #tpu.memory_space<any>>
    %c5_i32_109 = arith.constant 5 : i32
    %c0_i32_110 = arith.constant 0 : i32
    %137 = tpu.memref_slice %arg5[%c1_i32_105, %c5_i32_109, %c0_i32_110] : memref<2x8x128xf32, #tpu.memory_space<vmem>> -> memref<1x1x128xf32, #tpu.memory_space<vmem>>
    %138 = tpu.memref_squeeze %137 : memref<1x1x128xf32, #tpu.memory_space<vmem>> -> memref<1x128xf32, #tpu.memory_space<vmem>>
    %139 = tpu.memref_slice %arg6[%c1_i32_106, %c5_i32_107] : memref<2x8x!tpu.dma_semaphore, #tpu.memory_space<semaphore_mem>> -> memref<1x1x!tpu.dma_semaphore, #tpu.memory_space<semaphore_mem>>
    %140 = tpu.memref_squeeze %139 : memref<1x1x!tpu.dma_semaphore, #tpu.memory_space<semaphore_mem>> -> memref<!tpu.dma_semaphore, #tpu.memory_space<semaphore_mem>>
    tpu.enqueue_dma source(%136 : memref<1x128xf32, #tpu.memory_space<any>>) target(%138 : memref<1x128xf32, #tpu.memory_space<vmem>>) target_semaphore(%140 : memref<!tpu.dma_semaphore, #tpu.memory_space<semaphore_mem>>)
    %c14_i32 = arith.constant 14 : i32
    %141 = arith.addi %0, %c14_i32 : i32
    %142 = arith.index_cast %141 : i32 to index
    %143 = memref.load %arg1[%142] : memref<16xi32, #tpu.memory_space<smem>>
    %c0_i32_111 = arith.constant 0 : i32
    %c255_i32_112 = arith.constant 255 : i32
    %144 = arith.maxsi %c0_i32_111, %143 : i32
    %145 = arith.minsi %c255_i32_112, %144 : i32
    %c1_i32_113 = arith.constant 1 : i32
    %c1_i32_114 = arith.constant 1 : i32
    %c6_i32_115 = arith.constant 6 : i32
    %c0_i32_116 = arith.constant 0 : i32
    %146 = tpu.memref_slice %arg2[%145, %c0_i32_116] : memref<256x128xf32, #tpu.memory_space<any>> -> memref<1x128xf32, #tpu.memory_space<any>>
    %c6_i32_117 = arith.constant 6 : i32
    %c0_i32_118 = arith.constant 0 : i32
    %147 = tpu.memref_slice %arg5[%c1_i32_113, %c6_i32_117, %c0_i32_118] : memref<2x8x128xf32, #tpu.memory_space<vmem>> -> memref<1x1x128xf32, #tpu.memory_space<vmem>>
    %148 = tpu.memref_squeeze %147 : memref<1x1x128xf32, #tpu.memory_space<vmem>> -> memref<1x128xf32, #tpu.memory_space<vmem>>
    %149 = tpu.memref_slice %arg6[%c1_i32_114, %c6_i32_115] : memref<2x8x!tpu.dma_semaphore, #tpu.memory_space<semaphore_mem>> -> memref<1x1x!tpu.dma_semaphore, #tpu.memory_space<semaphore_mem>>
    %150 = tpu.memref_squeeze %149 : memref<1x1x!tpu.dma_semaphore, #tpu.memory_space<semaphore_mem>> -> memref<!tpu.dma_semaphore, #tpu.memory_space<semaphore_mem>>
    tpu.enqueue_dma source(%146 : memref<1x128xf32, #tpu.memory_space<any>>) target(%148 : memref<1x128xf32, #tpu.memory_space<vmem>>) target_semaphore(%150 : memref<!tpu.dma_semaphore, #tpu.memory_space<semaphore_mem>>)
    %c15_i32 = arith.constant 15 : i32
    %151 = arith.addi %0, %c15_i32 : i32
    %152 = arith.index_cast %151 : i32 to index
    %153 = memref.load %arg1[%152] : memref<16xi32, #tpu.memory_space<smem>>
    %c0_i32_119 = arith.constant 0 : i32
    %c255_i32_120 = arith.constant 255 : i32
    %154 = arith.maxsi %c0_i32_119, %153 : i32
    %155 = arith.minsi %c255_i32_120, %154 : i32
    %c1_i32_121 = arith.constant 1 : i32
    %c1_i32_122 = arith.constant 1 : i32
    %c7_i32_123 = arith.constant 7 : i32
    %c0_i32_124 = arith.constant 0 : i32
    %156 = tpu.memref_slice %arg2[%155, %c0_i32_124] : memref<256x128xf32, #tpu.memory_space<any>> -> memref<1x128xf32, #tpu.memory_space<any>>
    %c7_i32_125 = arith.constant 7 : i32
    %c0_i32_126 = arith.constant 0 : i32
    %157 = tpu.memref_slice %arg5[%c1_i32_121, %c7_i32_125, %c0_i32_126] : memref<2x8x128xf32, #tpu.memory_space<vmem>> -> memref<1x1x128xf32, #tpu.memory_space<vmem>>
    %158 = tpu.memref_squeeze %157 : memref<1x1x128xf32, #tpu.memory_space<vmem>> -> memref<1x128xf32, #tpu.memory_space<vmem>>
    %159 = tpu.memref_slice %arg6[%c1_i32_122, %c7_i32_123] : memref<2x8x!tpu.dma_semaphore, #tpu.memory_space<semaphore_mem>> -> memref<1x1x!tpu.dma_semaphore, #tpu.memory_space<semaphore_mem>>
    %160 = tpu.memref_squeeze %159 : memref<1x1x!tpu.dma_semaphore, #tpu.memory_space<semaphore_mem>> -> memref<!tpu.dma_semaphore, #tpu.memory_space<semaphore_mem>>
    tpu.enqueue_dma source(%156 : memref<1x128xf32, #tpu.memory_space<any>>) target(%158 : memref<1x128xf32, #tpu.memory_space<vmem>>) target_semaphore(%160 : memref<!tpu.dma_semaphore, #tpu.memory_space<semaphore_mem>>)
    %c0_i32_127 = arith.constant 0 : i32
    %c0_i32_128 = arith.constant 0 : i32
    %c0_i32_129 = arith.constant 0 : i32
    %c0_i32_130 = arith.constant 0 : i32
    %161 = tpu.memref_slice %arg2[%5, %c0_i32_130] : memref<256x128xf32, #tpu.memory_space<any>> -> memref<1x128xf32, #tpu.memory_space<any>>
    %c0_i32_131 = arith.constant 0 : i32
    %c0_i32_132 = arith.constant 0 : i32
    %162 = tpu.memref_slice %arg5[%c0_i32_127, %c0_i32_131, %c0_i32_132] : memref<2x8x128xf32, #tpu.memory_space<vmem>> -> memref<1x1x128xf32, #tpu.memory_space<vmem>>
    %163 = tpu.memref_squeeze %162 : memref<1x1x128xf32, #tpu.memory_space<vmem>> -> memref<1x128xf32, #tpu.memory_space<vmem>>
    %164 = tpu.memref_slice %arg6[%c0_i32_128, %c0_i32_129] : memref<2x8x!tpu.dma_semaphore, #tpu.memory_space<semaphore_mem>> -> memref<1x1x!tpu.dma_semaphore, #tpu.memory_space<semaphore_mem>>
    %165 = tpu.memref_squeeze %164 : memref<1x1x!tpu.dma_semaphore, #tpu.memory_space<semaphore_mem>> -> memref<!tpu.dma_semaphore, #tpu.memory_space<semaphore_mem>>
    tpu.wait_dma2 semaphore(%165 : memref<!tpu.dma_semaphore, #tpu.memory_space<semaphore_mem>>) src(%161 : memref<1x128xf32, #tpu.memory_space<any>>) dst(%163 : memref<1x128xf32, #tpu.memory_space<vmem>>)
    %c0_i32_133 = arith.constant 0 : i32
    %c0_i32_134 = arith.constant 0 : i32
    %c1_i32_135 = arith.constant 1 : i32
    %c0_i32_136 = arith.constant 0 : i32
    %166 = tpu.memref_slice %arg2[%15, %c0_i32_136] : memref<256x128xf32, #tpu.memory_space<any>> -> memref<1x128xf32, #tpu.memory_space<any>>
    %c1_i32_137 = arith.constant 1 : i32
    %c0_i32_138 = arith.constant 0 : i32
    %167 = tpu.memref_slice %arg5[%c0_i32_133, %c1_i32_137, %c0_i32_138] : memref<2x8x128xf32, #tpu.memory_space<vmem>> -> memref<1x1x128xf32, #tpu.memory_space<vmem>>
    %168 = tpu.memref_squeeze %167 : memref<1x1x128xf32, #tpu.memory_space<vmem>> -> memref<1x128xf32, #tpu.memory_space<vmem>>
    %169 = tpu.memref_slice %arg6[%c0_i32_134, %c1_i32_135] : memref<2x8x!tpu.dma_semaphore, #tpu.memory_space<semaphore_mem>> -> memref<1x1x!tpu.dma_semaphore, #tpu.memory_space<semaphore_mem>>
    %170 = tpu.memref_squeeze %169 : memref<1x1x!tpu.dma_semaphore, #tpu.memory_space<semaphore_mem>> -> memref<!tpu.dma_semaphore, #tpu.memory_space<semaphore_mem>>
    tpu.wait_dma2 semaphore(%170 : memref<!tpu.dma_semaphore, #tpu.memory_space<semaphore_mem>>) src(%166 : memref<1x128xf32, #tpu.memory_space<any>>) dst(%168 : memref<1x128xf32, #tpu.memory_space<vmem>>)
    %c0_i32_139 = arith.constant 0 : i32
    %c0_i32_140 = arith.constant 0 : i32
    %c2_i32_141 = arith.constant 2 : i32
    %c0_i32_142 = arith.constant 0 : i32
    %171 = tpu.memref_slice %arg2[%25, %c0_i32_142] : memref<256x128xf32, #tpu.memory_space<any>> -> memref<1x128xf32, #tpu.memory_space<any>>
    %c2_i32_143 = arith.constant 2 : i32
    %c0_i32_144 = arith.constant 0 : i32
    %172 = tpu.memref_slice %arg5[%c0_i32_139, %c2_i32_143, %c0_i32_144] : memref<2x8x128xf32, #tpu.memory_space<vmem>> -> memref<1x1x128xf32, #tpu.memory_space<vmem>>
    %173 = tpu.memref_squeeze %172 : memref<1x1x128xf32, #tpu.memory_space<vmem>> -> memref<1x128xf32, #tpu.memory_space<vmem>>
    %174 = tpu.memref_slice %arg6[%c0_i32_140, %c2_i32_141] : memref<2x8x!tpu.dma_semaphore, #tpu.memory_space<semaphore_mem>> -> memref<1x1x!tpu.dma_semaphore, #tpu.memory_space<semaphore_mem>>
    %175 = tpu.memref_squeeze %174 : memref<1x1x!tpu.dma_semaphore, #tpu.memory_space<semaphore_mem>> -> memref<!tpu.dma_semaphore, #tpu.memory_space<semaphore_mem>>
    tpu.wait_dma2 semaphore(%175 : memref<!tpu.dma_semaphore, #tpu.memory_space<semaphore_mem>>) src(%171 : memref<1x128xf32, #tpu.memory_space<any>>) dst(%173 : memref<1x128xf32, #tpu.memory_space<vmem>>)
    %c0_i32_145 = arith.constant 0 : i32
    %c0_i32_146 = arith.constant 0 : i32
    %c3_i32_147 = arith.constant 3 : i32
    %c0_i32_148 = arith.constant 0 : i32
    %176 = tpu.memref_slice %arg2[%35, %c0_i32_148] : memref<256x128xf32, #tpu.memory_space<any>> -> memref<1x128xf32, #tpu.memory_space<any>>
    %c3_i32_149 = arith.constant 3 : i32
    %c0_i32_150 = arith.constant 0 : i32
    %177 = tpu.memref_slice %arg5[%c0_i32_145, %c3_i32_149, %c0_i32_150] : memref<2x8x128xf32, #tpu.memory_space<vmem>> -> memref<1x1x128xf32, #tpu.memory_space<vmem>>
    %178 = tpu.memref_squeeze %177 : memref<1x1x128xf32, #tpu.memory_space<vmem>> -> memref<1x128xf32, #tpu.memory_space<vmem>>
    %179 = tpu.memref_slice %arg6[%c0_i32_146, %c3_i32_147] : memref<2x8x!tpu.dma_semaphore, #tpu.memory_space<semaphore_mem>> -> memref<1x1x!tpu.dma_semaphore, #tpu.memory_space<semaphore_mem>>
    %180 = tpu.memref_squeeze %179 : memref<1x1x!tpu.dma_semaphore, #tpu.memory_space<semaphore_mem>> -> memref<!tpu.dma_semaphore, #tpu.memory_space<semaphore_mem>>
    tpu.wait_dma2 semaphore(%180 : memref<!tpu.dma_semaphore, #tpu.memory_space<semaphore_mem>>) src(%176 : memref<1x128xf32, #tpu.memory_space<any>>) dst(%178 : memref<1x128xf32, #tpu.memory_space<vmem>>)
    %c0_i32_151 = arith.constant 0 : i32
    %c0_i32_152 = arith.constant 0 : i32
    %c4_i32_153 = arith.constant 4 : i32
    %c0_i32_154 = arith.constant 0 : i32
    %181 = tpu.memref_slice %arg2[%45, %c0_i32_154] : memref<256x128xf32, #tpu.memory_space<any>> -> memref<1x128xf32, #tpu.memory_space<any>>
    %c4_i32_155 = arith.constant 4 : i32
    %c0_i32_156 = arith.constant 0 : i32
    %182 = tpu.memref_slice %arg5[%c0_i32_151, %c4_i32_155, %c0_i32_156] : memref<2x8x128xf32, #tpu.memory_space<vmem>> -> memref<1x1x128xf32, #tpu.memory_space<vmem>>
    %183 = tpu.memref_squeeze %182 : memref<1x1x128xf32, #tpu.memory_space<vmem>> -> memref<1x128xf32, #tpu.memory_space<vmem>>
    %184 = tpu.memref_slice %arg6[%c0_i32_152, %c4_i32_153] : memref<2x8x!tpu.dma_semaphore, #tpu.memory_space<semaphore_mem>> -> memref<1x1x!tpu.dma_semaphore, #tpu.memory_space<semaphore_mem>>
    %185 = tpu.memref_squeeze %184 : memref<1x1x!tpu.dma_semaphore, #tpu.memory_space<semaphore_mem>> -> memref<!tpu.dma_semaphore, #tpu.memory_space<semaphore_mem>>
    tpu.wait_dma2 semaphore(%185 : memref<!tpu.dma_semaphore, #tpu.memory_space<semaphore_mem>>) src(%181 : memref<1x128xf32, #tpu.memory_space<any>>) dst(%183 : memref<1x128xf32, #tpu.memory_space<vmem>>)
    %c0_i32_157 = arith.constant 0 : i32
    %c0_i32_158 = arith.constant 0 : i32
    %c5_i32_159 = arith.constant 5 : i32
    %c0_i32_160 = arith.constant 0 : i32
    %186 = tpu.memref_slice %arg2[%55, %c0_i32_160] : memref<256x128xf32, #tpu.memory_space<any>> -> memref<1x128xf32, #tpu.memory_space<any>>
    %c5_i32_161 = arith.constant 5 : i32
    %c0_i32_162 = arith.constant 0 : i32
    %187 = tpu.memref_slice %arg5[%c0_i32_157, %c5_i32_161, %c0_i32_162] : memref<2x8x128xf32, #tpu.memory_space<vmem>> -> memref<1x1x128xf32, #tpu.memory_space<vmem>>
    %188 = tpu.memref_squeeze %187 : memref<1x1x128xf32, #tpu.memory_space<vmem>> -> memref<1x128xf32, #tpu.memory_space<vmem>>
    %189 = tpu.memref_slice %arg6[%c0_i32_158, %c5_i32_159] : memref<2x8x!tpu.dma_semaphore, #tpu.memory_space<semaphore_mem>> -> memref<1x1x!tpu.dma_semaphore, #tpu.memory_space<semaphore_mem>>
    %190 = tpu.memref_squeeze %189 : memref<1x1x!tpu.dma_semaphore, #tpu.memory_space<semaphore_mem>> -> memref<!tpu.dma_semaphore, #tpu.memory_space<semaphore_mem>>
    tpu.wait_dma2 semaphore(%190 : memref<!tpu.dma_semaphore, #tpu.memory_space<semaphore_mem>>) src(%186 : memref<1x128xf32, #tpu.memory_space<any>>) dst(%188 : memref<1x128xf32, #tpu.memory_space<vmem>>)
    %c0_i32_163 = arith.constant 0 : i32
    %c0_i32_164 = arith.constant 0 : i32
    %c6_i32_165 = arith.constant 6 : i32
    %c0_i32_166 = arith.constant 0 : i32
    %191 = tpu.memref_slice %arg2[%65, %c0_i32_166] : memref<256x128xf32, #tpu.memory_space<any>> -> memref<1x128xf32, #tpu.memory_space<any>>
    %c6_i32_167 = arith.constant 6 : i32
    %c0_i32_168 = arith.constant 0 : i32
    %192 = tpu.memref_slice %arg5[%c0_i32_163, %c6_i32_167, %c0_i32_168] : memref<2x8x128xf32, #tpu.memory_space<vmem>> -> memref<1x1x128xf32, #tpu.memory_space<vmem>>
    %193 = tpu.memref_squeeze %192 : memref<1x1x128xf32, #tpu.memory_space<vmem>> -> memref<1x128xf32, #tpu.memory_space<vmem>>
    %194 = tpu.memref_slice %arg6[%c0_i32_164, %c6_i32_165] : memref<2x8x!tpu.dma_semaphore, #tpu.memory_space<semaphore_mem>> -> memref<1x1x!tpu.dma_semaphore, #tpu.memory_space<semaphore_mem>>
    %195 = tpu.memref_squeeze %194 : memref<1x1x!tpu.dma_semaphore, #tpu.memory_space<semaphore_mem>> -> memref<!tpu.dma_semaphore, #tpu.memory_space<semaphore_mem>>
    tpu.wait_dma2 semaphore(%195 : memref<!tpu.dma_semaphore, #tpu.memory_space<semaphore_mem>>) src(%191 : memref<1x128xf32, #tpu.memory_space<any>>) dst(%193 : memref<1x128xf32, #tpu.memory_space<vmem>>)
    %c0_i32_169 = arith.constant 0 : i32
    %c0_i32_170 = arith.constant 0 : i32
    %c7_i32_171 = arith.constant 7 : i32
    %c0_i32_172 = arith.constant 0 : i32
    %196 = tpu.memref_slice %arg2[%75, %c0_i32_172] : memref<256x128xf32, #tpu.memory_space<any>> -> memref<1x128xf32, #tpu.memory_space<any>>
    %c7_i32_173 = arith.constant 7 : i32
    %c0_i32_174 = arith.constant 0 : i32
    %197 = tpu.memref_slice %arg5[%c0_i32_169, %c7_i32_173, %c0_i32_174] : memref<2x8x128xf32, #tpu.memory_space<vmem>> -> memref<1x1x128xf32, #tpu.memory_space<vmem>>
    %198 = tpu.memref_squeeze %197 : memref<1x1x128xf32, #tpu.memory_space<vmem>> -> memref<1x128xf32, #tpu.memory_space<vmem>>
    %199 = tpu.memref_slice %arg6[%c0_i32_170, %c7_i32_171] : memref<2x8x!tpu.dma_semaphore, #tpu.memory_space<semaphore_mem>> -> memref<1x1x!tpu.dma_semaphore, #tpu.memory_space<semaphore_mem>>
    %200 = tpu.memref_squeeze %199 : memref<1x1x!tpu.dma_semaphore, #tpu.memory_space<semaphore_mem>> -> memref<!tpu.dma_semaphore, #tpu.memory_space<semaphore_mem>>
    tpu.wait_dma2 semaphore(%200 : memref<!tpu.dma_semaphore, #tpu.memory_space<semaphore_mem>>) src(%196 : memref<1x128xf32, #tpu.memory_space<any>>) dst(%198 : memref<1x128xf32, #tpu.memory_space<vmem>>)
    %c1_i32_175 = arith.constant 1 : i32
    %c1_i32_176 = arith.constant 1 : i32
    %c0_i32_177 = arith.constant 0 : i32
    %c0_i32_178 = arith.constant 0 : i32
    %201 = tpu.memref_slice %arg2[%85, %c0_i32_178] : memref<256x128xf32, #tpu.memory_space<any>> -> memref<1x128xf32, #tpu.memory_space<any>>
    %c0_i32_179 = arith.constant 0 : i32
    %c0_i32_180 = arith.constant 0 : i32
    %202 = tpu.memref_slice %arg5[%c1_i32_175, %c0_i32_179, %c0_i32_180] : memref<2x8x128xf32, #tpu.memory_space<vmem>> -> memref<1x1x128xf32, #tpu.memory_space<vmem>>
    %203 = tpu.memref_squeeze %202 : memref<1x1x128xf32, #tpu.memory_space<vmem>> -> memref<1x128xf32, #tpu.memory_space<vmem>>
    %204 = tpu.memref_slice %arg6[%c1_i32_176, %c0_i32_177] : memref<2x8x!tpu.dma_semaphore, #tpu.memory_space<semaphore_mem>> -> memref<1x1x!tpu.dma_semaphore, #tpu.memory_space<semaphore_mem>>
    %205 = tpu.memref_squeeze %204 : memref<1x1x!tpu.dma_semaphore, #tpu.memory_space<semaphore_mem>> -> memref<!tpu.dma_semaphore, #tpu.memory_space<semaphore_mem>>
    tpu.wait_dma2 semaphore(%205 : memref<!tpu.dma_semaphore, #tpu.memory_space<semaphore_mem>>) src(%201 : memref<1x128xf32, #tpu.memory_space<any>>) dst(%203 : memref<1x128xf32, #tpu.memory_space<vmem>>)
    %c1_i32_181 = arith.constant 1 : i32
    %c1_i32_182 = arith.constant 1 : i32
    %c1_i32_183 = arith.constant 1 : i32
    %c0_i32_184 = arith.constant 0 : i32
    %206 = tpu.memref_slice %arg2[%95, %c0_i32_184] : memref<256x128xf32, #tpu.memory_space<any>> -> memref<1x128xf32, #tpu.memory_space<any>>
    %c1_i32_185 = arith.constant 1 : i32
    %c0_i32_186 = arith.constant 0 : i32
    %207 = tpu.memref_slice %arg5[%c1_i32_181, %c1_i32_185, %c0_i32_186] : memref<2x8x128xf32, #tpu.memory_space<vmem>> -> memref<1x1x128xf32, #tpu.memory_space<vmem>>
    %208 = tpu.memref_squeeze %207 : memref<1x1x128xf32, #tpu.memory_space<vmem>> -> memref<1x128xf32, #tpu.memory_space<vmem>>
    %209 = tpu.memref_slice %arg6[%c1_i32_182, %c1_i32_183] : memref<2x8x!tpu.dma_semaphore, #tpu.memory_space<semaphore_mem>> -> memref<1x1x!tpu.dma_semaphore, #tpu.memory_space<semaphore_mem>>
    %210 = tpu.memref_squeeze %209 : memref<1x1x!tpu.dma_semaphore, #tpu.memory_space<semaphore_mem>> -> memref<!tpu.dma_semaphore, #tpu.memory_space<semaphore_mem>>
    tpu.wait_dma2 semaphore(%210 : memref<!tpu.dma_semaphore, #tpu.memory_space<semaphore_mem>>) src(%206 : memref<1x128xf32, #tpu.memory_space<any>>) dst(%208 : memref<1x128xf32, #tpu.memory_space<vmem>>)
    %c1_i32_187 = arith.constant 1 : i32
    %c1_i32_188 = arith.constant 1 : i32
    %c2_i32_189 = arith.constant 2 : i32
    %c0_i32_190 = arith.constant 0 : i32
    %211 = tpu.memref_slice %arg2[%105, %c0_i32_190] : memref<256x128xf32, #tpu.memory_space<any>> -> memref<1x128xf32, #tpu.memory_space<any>>
    %c2_i32_191 = arith.constant 2 : i32
    %c0_i32_192 = arith.constant 0 : i32
    %212 = tpu.memref_slice %arg5[%c1_i32_187, %c2_i32_191, %c0_i32_192] : memref<2x8x128xf32, #tpu.memory_space<vmem>> -> memref<1x1x128xf32, #tpu.memory_space<vmem>>
    %213 = tpu.memref_squeeze %212 : memref<1x1x128xf32, #tpu.memory_space<vmem>> -> memref<1x128xf32, #tpu.memory_space<vmem>>
    %214 = tpu.memref_slice %arg6[%c1_i32_188, %c2_i32_189] : memref<2x8x!tpu.dma_semaphore, #tpu.memory_space<semaphore_mem>> -> memref<1x1x!tpu.dma_semaphore, #tpu.memory_space<semaphore_mem>>
    %215 = tpu.memref_squeeze %214 : memref<1x1x!tpu.dma_semaphore, #tpu.memory_space<semaphore_mem>> -> memref<!tpu.dma_semaphore, #tpu.memory_space<semaphore_mem>>
    tpu.wait_dma2 semaphore(%215 : memref<!tpu.dma_semaphore, #tpu.memory_space<semaphore_mem>>) src(%211 : memref<1x128xf32, #tpu.memory_space<any>>) dst(%213 : memref<1x128xf32, #tpu.memory_space<vmem>>)
    %c1_i32_193 = arith.constant 1 : i32
    %c1_i32_194 = arith.constant 1 : i32
    %c3_i32_195 = arith.constant 3 : i32
    %c0_i32_196 = arith.constant 0 : i32
    %216 = tpu.memref_slice %arg2[%115, %c0_i32_196] : memref<256x128xf32, #tpu.memory_space<any>> -> memref<1x128xf32, #tpu.memory_space<any>>
    %c3_i32_197 = arith.constant 3 : i32
    %c0_i32_198 = arith.constant 0 : i32
    %217 = tpu.memref_slice %arg5[%c1_i32_193, %c3_i32_197, %c0_i32_198] : memref<2x8x128xf32, #tpu.memory_space<vmem>> -> memref<1x1x128xf32, #tpu.memory_space<vmem>>
    %218 = tpu.memref_squeeze %217 : memref<1x1x128xf32, #tpu.memory_space<vmem>> -> memref<1x128xf32, #tpu.memory_space<vmem>>
    %219 = tpu.memref_slice %arg6[%c1_i32_194, %c3_i32_195] : memref<2x8x!tpu.dma_semaphore, #tpu.memory_space<semaphore_mem>> -> memref<1x1x!tpu.dma_semaphore, #tpu.memory_space<semaphore_mem>>
    %220 = tpu.memref_squeeze %219 : memref<1x1x!tpu.dma_semaphore, #tpu.memory_space<semaphore_mem>> -> memref<!tpu.dma_semaphore, #tpu.memory_space<semaphore_mem>>
    tpu.wait_dma2 semaphore(%220 : memref<!tpu.dma_semaphore, #tpu.memory_space<semaphore_mem>>) src(%216 : memref<1x128xf32, #tpu.memory_space<any>>) dst(%218 : memref<1x128xf32, #tpu.memory_space<vmem>>)
    %c1_i32_199 = arith.constant 1 : i32
    %c1_i32_200 = arith.constant 1 : i32
    %c4_i32_201 = arith.constant 4 : i32
    %c0_i32_202 = arith.constant 0 : i32
    %221 = tpu.memref_slice %arg2[%125, %c0_i32_202] : memref<256x128xf32, #tpu.memory_space<any>> -> memref<1x128xf32, #tpu.memory_space<any>>
    %c4_i32_203 = arith.constant 4 : i32
    %c0_i32_204 = arith.constant 0 : i32
    %222 = tpu.memref_slice %arg5[%c1_i32_199, %c4_i32_203, %c0_i32_204] : memref<2x8x128xf32, #tpu.memory_space<vmem>> -> memref<1x1x128xf32, #tpu.memory_space<vmem>>
    %223 = tpu.memref_squeeze %222 : memref<1x1x128xf32, #tpu.memory_space<vmem>> -> memref<1x128xf32, #tpu.memory_space<vmem>>
    %224 = tpu.memref_slice %arg6[%c1_i32_200, %c4_i32_201] : memref<2x8x!tpu.dma_semaphore, #tpu.memory_space<semaphore_mem>> -> memref<1x1x!tpu.dma_semaphore, #tpu.memory_space<semaphore_mem>>
    %225 = tpu.memref_squeeze %224 : memref<1x1x!tpu.dma_semaphore, #tpu.memory_space<semaphore_mem>> -> memref<!tpu.dma_semaphore, #tpu.memory_space<semaphore_mem>>
    tpu.wait_dma2 semaphore(%225 : memref<!tpu.dma_semaphore, #tpu.memory_space<semaphore_mem>>) src(%221 : memref<1x128xf32, #tpu.memory_space<any>>) dst(%223 : memref<1x128xf32, #tpu.memory_space<vmem>>)
    %c1_i32_205 = arith.constant 1 : i32
    %c1_i32_206 = arith.constant 1 : i32
    %c5_i32_207 = arith.constant 5 : i32
    %c0_i32_208 = arith.constant 0 : i32
    %226 = tpu.memref_slice %arg2[%135, %c0_i32_208] : memref<256x128xf32, #tpu.memory_space<any>> -> memref<1x128xf32, #tpu.memory_space<any>>
    %c5_i32_209 = arith.constant 5 : i32
    %c0_i32_210 = arith.constant 0 : i32
    %227 = tpu.memref_slice %arg5[%c1_i32_205, %c5_i32_209, %c0_i32_210] : memref<2x8x128xf32, #tpu.memory_space<vmem>> -> memref<1x1x128xf32, #tpu.memory_space<vmem>>
    %228 = tpu.memref_squeeze %227 : memref<1x1x128xf32, #tpu.memory_space<vmem>> -> memref<1x128xf32, #tpu.memory_space<vmem>>
    %229 = tpu.memref_slice %arg6[%c1_i32_206, %c5_i32_207] : memref<2x8x!tpu.dma_semaphore, #tpu.memory_space<semaphore_mem>> -> memref<1x1x!tpu.dma_semaphore, #tpu.memory_space<semaphore_mem>>
    %230 = tpu.memref_squeeze %229 : memref<1x1x!tpu.dma_semaphore, #tpu.memory_space<semaphore_mem>> -> memref<!tpu.dma_semaphore, #tpu.memory_space<semaphore_mem>>
    tpu.wait_dma2 semaphore(%230 : memref<!tpu.dma_semaphore, #tpu.memory_space<semaphore_mem>>) src(%226 : memref<1x128xf32, #tpu.memory_space<any>>) dst(%228 : memref<1x128xf32, #tpu.memory_space<vmem>>)
    %c1_i32_211 = arith.constant 1 : i32
    %c1_i32_212 = arith.constant 1 : i32
    %c6_i32_213 = arith.constant 6 : i32
    %c0_i32_214 = arith.constant 0 : i32
    %231 = tpu.memref_slice %arg2[%145, %c0_i32_214] : memref<256x128xf32, #tpu.memory_space<any>> -> memref<1x128xf32, #tpu.memory_space<any>>
    %c6_i32_215 = arith.constant 6 : i32
    %c0_i32_216 = arith.constant 0 : i32
    %232 = tpu.memref_slice %arg5[%c1_i32_211, %c6_i32_215, %c0_i32_216] : memref<2x8x128xf32, #tpu.memory_space<vmem>> -> memref<1x1x128xf32, #tpu.memory_space<vmem>>
    %233 = tpu.memref_squeeze %232 : memref<1x1x128xf32, #tpu.memory_space<vmem>> -> memref<1x128xf32, #tpu.memory_space<vmem>>
    %234 = tpu.memref_slice %arg6[%c1_i32_212, %c6_i32_213] : memref<2x8x!tpu.dma_semaphore, #tpu.memory_space<semaphore_mem>> -> memref<1x1x!tpu.dma_semaphore, #tpu.memory_space<semaphore_mem>>
    %235 = tpu.memref_squeeze %234 : memref<1x1x!tpu.dma_semaphore, #tpu.memory_space<semaphore_mem>> -> memref<!tpu.dma_semaphore, #tpu.memory_space<semaphore_mem>>
    tpu.wait_dma2 semaphore(%235 : memref<!tpu.dma_semaphore, #tpu.memory_space<semaphore_mem>>) src(%231 : memref<1x128xf32, #tpu.memory_space<any>>) dst(%233 : memref<1x128xf32, #tpu.memory_space<vmem>>)
    %c1_i32_217 = arith.constant 1 : i32
    %c1_i32_218 = arith.constant 1 : i32
    %c7_i32_219 = arith.constant 7 : i32
    %c0_i32_220 = arith.constant 0 : i32
    %236 = tpu.memref_slice %arg2[%155, %c0_i32_220] : memref<256x128xf32, #tpu.memory_space<any>> -> memref<1x128xf32, #tpu.memory_space<any>>
    %c7_i32_221 = arith.constant 7 : i32
    %c0_i32_222 = arith.constant 0 : i32
    %237 = tpu.memref_slice %arg5[%c1_i32_217, %c7_i32_221, %c0_i32_222] : memref<2x8x128xf32, #tpu.memory_space<vmem>> -> memref<1x1x128xf32, #tpu.memory_space<vmem>>
    %238 = tpu.memref_squeeze %237 : memref<1x1x128xf32, #tpu.memory_space<vmem>> -> memref<1x128xf32, #tpu.memory_space<vmem>>
    %239 = tpu.memref_slice %arg6[%c1_i32_218, %c7_i32_219] : memref<2x8x!tpu.dma_semaphore, #tpu.memory_space<semaphore_mem>> -> memref<1x1x!tpu.dma_semaphore, #tpu.memory_space<semaphore_mem>>
    %240 = tpu.memref_squeeze %239 : memref<1x1x!tpu.dma_semaphore, #tpu.memory_space<semaphore_mem>> -> memref<!tpu.dma_semaphore, #tpu.memory_space<semaphore_mem>>
    tpu.wait_dma2 semaphore(%240 : memref<!tpu.dma_semaphore, #tpu.memory_space<semaphore_mem>>) src(%236 : memref<1x128xf32, #tpu.memory_space<any>>) dst(%238 : memref<1x128xf32, #tpu.memory_space<vmem>>)
    %c0 = arith.constant 0 : index
    %c0_223 = arith.constant 0 : index
    %c0_224 = arith.constant 0 : index
    %241 = vector.load %arg5[%c0, %c0_223, %c0_224] : memref<2x8x128xf32, #tpu.memory_space<vmem>>, vector<2x8x128xf32>
    %c0_225 = arith.constant 0 : index
    %c0_226 = arith.constant 0 : index
    %242 = vector.load %arg3[%c0_225, %c0_226] : memref<8x128xf32, #tpu.memory_space<vmem>>, vector<8x128xf32>
    %243 = vector.shape_cast %242 : vector<8x128xf32> to vector<1x8x128xf32>
    %244 = vector.broadcast %243 : vector<1x8x128xf32> to vector<2x8x128xf32>
    %245 = arith.addf %241, %244 : vector<2x8x128xf32>
    %c0_227 = arith.constant 0 : index
    %c0_228 = arith.constant 0 : index
    %c0_229 = arith.constant 0 : index
    %246 = vector.load %arg4[%c0_227, %c0_228, %c0_229] : memref<2x8x128xf32, #tpu.memory_space<vmem>>, vector<2x8x128xf32>
    tpu.vector_store %arg4[%c0_227, %c0_228, %c0_229], %245 {strides = array<i32>} : memref<2x8x128xf32, #tpu.memory_space<vmem>>, vector<2x8x128xf32>,
    return
  }
  func.func @transform_1(%arg0: i32, %arg1: memref<16xi32, #tpu.memory_space<smem>>) -> (i32, i32) {
    %c0_i32 = arith.constant 0 : i32
    %c0_i32_0 = arith.constant 0 : i32
    %c0_i32_1 = arith.constant 0 : i32
    return %c0_i32, %c0_i32_0 : i32, i32
  }
  func.func @transform_2(%arg0: i32, %arg1: memref<16xi32, #tpu.memory_space<smem>>) -> (i32, i32, i32) {
    %c0_i32 = arith.constant 0 : i32
    %c0_i32_0 = arith.constant 0 : i32
    %c0_i32_1 = arith.constant 0 : i32
    return %arg0, %c0_i32, %c0_i32_0 : i32, i32, i32
  }
}

</mosaic_0001>

<bundles_post_ra>
// kernel: tpu_custom_call.1
= control target key start
LH: loop header
LB: loop body
LE: loop exit
PB: predicated region body
PF: predicated region fallthrough
CT: control target
= control target key end

     0   :  { %s1215_s15 = smov [#allocation5]   ;;  %s1519_s0 = inlined_call_operand.hbm [shape: s32[16], index: 0, kind: input, shape index: {}]   ;;  %s1520_s1 = inlined_call_operand.hbm [shape: f32[256,128], index: 1, kind: input, shape index: {}]   ;;  %s1521_s2 = inlined_call_operand.hbm [shape: f32[8,128], index: 2, kind: input, shape index: {}]   ;;  %s1522_s3 = inlined_call_operand.hbm [shape: f32[2,8,128], index: 3, kind: output, shape index: {}]  }
   0x1   :  { %s9_s14 = sshll.u32 %s1519_s0, 4  ;;  %s10_s14 = int_to_ptr.hbm [resolvable:$true] %s9_s14 }
   0x2   :  { %12 = dma.hbm_to_smem %s10_s14, 16, %s1215_s15, [#allocation4] }
   0x3   :  { %1177 = dma.done.wait [#allocation4], 16 }
   0x4   :  { %1178 = vsyncadd [#allocation4], 4294967280 }
   0x5   :  { %15 = sfence }
   0x6   :  { %16 = vsyncpa [#allocation7], 0 }
   0x7   :  { %17 = vsyncpa [#allocation8], 0  ;;  %s23_s18 = sshll.u32 %s1521_s2, 4  ;;  %s1216_s19 = smov [#allocation6]   ;;  %s24_s18 = int_to_ptr.hbm [resolvable:$true] %s23_s18 }
   0x8   :  { %s25_s20 = sshll.u32 %s1216_s19, 4  ;;  %s26_s20 = int_to_ptr.vmem [resolvable:$true] %s25_s20 }
   0x9   :  { %28 = dma.hbm_to_vmem [thread:$0]  %s24_s18, 128, %s26_s20, [#allocation7]  }
   0xa   :  { %1179 = dma.done.wait [#allocation7], 128  }
   0xb   :  { %1180 = vsyncadd [#allocation7], 4294967168  ;;  %s34_s0 = sld [smem:[#allocation5]]  ;;  %s1217_s21 = smov [#allocation2]  }
   0xc   :  { %s1262_s22 = sshll.u32 %s1217_s21, 4  ;;  %s574_s23 = sld [smem:[#allocation5 + $0x1]]  ;;  %s50_s22 = int_to_ptr.vmem [resolvable:$true] %s1262_s22 }
   0xd   :  { %s1218_s24 = smov [#allocation2 + $0x1]   ;;  %s1267_s26 = sld [smem:[#allocation5 + $0x2]] }
   0xe   :  { %s1265_s25 = sshll.u32 %s1218_s24, 4  ;;  %s1219_s2 = smov [#allocation2 + $0x2]   ;;  %s72_s25 = int_to_ptr.vmem [resolvable:$true] %s1265_s25 }
   0xf   :  { %s1270_s27 = sshll.u32 %s1219_s2, 4  ;;  %s1273_s28 = sld [smem:[#allocation5 + $0x3]]  ;;  %s94_s27 = int_to_ptr.vmem [resolvable:$true] %s1270_s27 }
  0x10   :  { %s1285_s14 = scalar_lea.hbm %s1520_s1, 256 }
  0x11   :  { %p35_p0 = scmp.gt.s32.totalorder %s34_s0, 0  ;;  %p569_p1 = scmp.lt.s32.totalorder %s34_s0, 255 }
  0x12   :  { %p55_p2 = scmp.gt.s32.totalorder %s574_s23, 0  ;;  %p575_p3 = scmp.lt.s32.totalorder %s574_s23, 255 }
  0x13   :  { %s1524_s0 = smov (!%p35_p0, %s34_s0), 0  ;;  %p77_p4 = scmp.gt.s32.totalorder %s1267_s26, 0 }
  0x14   :  { %s1526_s23 = smov (!%p55_p2, %s574_s23), 0  ;;  %s1528_s0 = smov (!%p569_p1, %s1524_s0), 255 }
  0x15   :  { %s1530_s23 = smov (!%p575_p3, %s1526_s23), 255  ;;  %s39_s4 = scalar_lea.hbm %s1520_s1, %s1528_s0 }
  0x16   :  { %s47_s5 = sshll.u32 %s39_s4, 4  ;;  %s59_s8 = scalar_lea.hbm %s1520_s1, %s1530_s23  ;;  %s48_s5 = int_to_ptr.hbm [resolvable:$true] %s47_s5 }
  0x17   :  { %s69_s9 = sshll.u32 %s59_s8, 4  ;;  %s769_s10 = sshra.s32 %s48_s5, 4  ;;  %s770_s10 = int_to_ptr.hbm [resolvable:$true] %s769_s10  ;;  %s70_s9 = int_to_ptr.hbm [resolvable:$true] %s69_s9 }
  0x18   :  { %s771_s11 = scalar_lea.hbm %s770_s10, 1  ;;  %p774_p6 = scmp.lt.s32.totalorder %s770_s10, %s1520_s1 }
  0x19   :  { %p772_p5 = scmp.ne.s32.totalorder %s770_s10, %s771_s11  ;;  %p775_p7 = scmp.lt.s32.totalorder %s1285_s14, %s771_s11 }
  0x1b   :  { %p776_p8 = por %p775_p7, %p774_p6 }
  0x1d   :  { %p777_p9 = pnand %p776_p8, %p772_p5 }
  0x1f   :  { %780 = shalt.err (!%p777_p9)  }
  0x20   :  { %52 = dma.hbm_to_vmem [thread:$0]  %s48_s5, 16, %s50_s22, [#allocation3] }
  0x21   :  { %p581_p10 = scmp.lt.s32.totalorder %s1267_s26, 255  ;;  %s793_s17 = sshra.s32 %s70_s9, 4  ;;  %s794_s17 = int_to_ptr.hbm [resolvable:$true] %s793_s17 }
  0x22   :  { %s795_s18 = scalar_lea.hbm %s794_s17, 1  ;;  %p798_p12 = scmp.lt.s32.totalorder %s794_s17, %s1520_s1 }
  0x23   :  { %p796_p11 = scmp.ne.s32.totalorder %s794_s17, %s795_s18  ;;  %p799_p13 = scmp.lt.s32.totalorder %s1285_s14, %s795_s18 }
  0x25   :  { %p800_p0 = por %p799_p13, %p798_p12 }
  0x27   :  { %p801_p1 = pnand %p800_p0, %p796_p11 }
  0x29   :  { %804 = shalt.err (!%p801_p1)  }
  0x2a   :  { %74 = dma.hbm_to_vmem [thread:$0]  %s70_s9, 16, %s72_s25, [#allocation3 + $0x1] }
  0x2b   :  { %s1532_s26 = smov (!%p77_p4, %s1267_s26), 0  ;;  %p99_p2 = scmp.gt.s32.totalorder %s1273_s28, 0 }
  0x2c   :  { %s1534_s26 = smov (!%p581_p10, %s1532_s26), 255  ;;  %p587_p3 = scmp.lt.s32.totalorder %s1273_s28, 255 }
  0x2d   :  { %s100_s0 = scalar_select %p99_p2, %s1273_s28, 0 }
  0x2e   :  { %s81_s23 = scalar_lea.hbm %s1520_s1, %s1534_s26  ;;  %s1220_s2 = smov [#allocation2 + $0x3]  }
  0x2f   :  { %s91_s24 = sshll.u32 %s81_s23, 4  ;;  %s1309_s29 = sshll.u32 %s1220_s2, 4  ;;  %s92_s24 = int_to_ptr.hbm [resolvable:$true] %s91_s24  ;;  %s116_s29 = int_to_ptr.vmem [resolvable:$true] %s1309_s29 }
  0x30   :  { %s1311_s30 = sld [smem:[#allocation5 + $0x4]]  ;;  %s817_s4 = sshra.s32 %s92_s24, 4  ;;  %s818_s4 = int_to_ptr.hbm [resolvable:$true] %s817_s4 }
  0x31   :  { %s819_s25 = scalar_lea.hbm %s818_s4, 1  ;;  %p822_p5 = scmp.lt.s32.totalorder %s818_s4, %s1520_s1 }
  0x32   :  { %p820_p4 = scmp.ne.s32.totalorder %s818_s4, %s819_s25  ;;  %p823_p6 = scmp.lt.s32.totalorder %s1285_s14, %s819_s25 }
  0x34   :  { %p824_p7 = por %p823_p6, %p822_p5 }
  0x36   :  { %p825_p8 = pnand %p824_p7, %p820_p4 }
  0x38   :  { %828 = shalt.err (!%p825_p8)  }
  0x39   :  { %96 = dma.hbm_to_vmem [thread:$0]  %s92_s24, 16, %s94_s27, [#allocation3 + $0x2] }
  0x3a   :  { %s1536_s0 = smov (!%p587_p3, %s100_s0), 255  ;;  %s1321_s26 = sld [smem:[#allocation5 + $0x5]] }
  0x3b   :  { %s103_s9 = scalar_lea.hbm %s1520_s1, %s1536_s0  ;;  %s1221_s11 = smov [#allocation2 + $0x4]  }
  0x3c   :  { %s113_s10 = sshll.u32 %s103_s9, 4  ;;  %s1327_s12 = sshll.u32 %s1221_s11, 4  ;;  %s114_s10 = int_to_ptr.hbm [resolvable:$true] %s113_s10  ;;  %s138_s12 = int_to_ptr.vmem [resolvable:$true] %s1327_s12 }
  0x3d   :  { %p121_p9 = scmp.gt.s32.totalorder %s1311_s30, 0  ;;  %s841_s13 = sshra.s32 %s114_s10, 4  ;;  %s842_s13 = int_to_ptr.hbm [resolvable:$true] %s841_s13 }
  0x3e   :  { %s843_s15 = scalar_lea.hbm %s842_s13, 1  ;;  %p846_p11 = scmp.lt.s32.totalorder %s842_s13, %s1520_s1 }
  0x3f   :  { %p844_p10 = scmp.ne.s32.totalorder %s842_s13, %s843_s15  ;;  %p847_p12 = scmp.lt.s32.totalorder %s1285_s14, %s843_s15 }
  0x41   :  { %p848_p13 = por %p847_p12, %p846_p11 }
  0x43   :  { %p849_p0 = pnand %p848_p13, %p844_p10 }
  0x45   :  { %852 = shalt.err (!%p849_p0)  }
  0x46   :  { %118 = dma.hbm_to_vmem [thread:$0]  %s114_s10, 16, %s116_s29, [#allocation3 + $0x3] }
  0x47   :  { %s122_s16 = scalar_select %p121_p9, %s1311_s30, 0 }
  0x48   :  { %p593_p1 = scmp.lt.s32.totalorder %s1311_s30, 255  ;;  %p143_p2 = scmp.gt.s32.totalorder %s1321_s26, 0 }
  0x49   :  { %p599_p3 = scmp.lt.s32.totalorder %s1321_s26, 255  ;;  %s1222_s21 = smov [#allocation2 + $0x5]  }
  0x4a   :  { %s1538_s16 = smov (!%p593_p1, %s122_s16), 255  ;;  %s1343_s22 = sshll.u32 %s1222_s21, 4  ;;  %s160_s22 = int_to_ptr.vmem [resolvable:$true] %s1343_s22 }
  0x4b   :  { %s144_s17 = scalar_select %p143_p2, %s1321_s26, 0 }
  0x4c   :  { %s125_s20 = scalar_lea.hbm %s1520_s1, %s1538_s16  ;;  %s1345_s23 = sld [smem:[#allocation5 + $0x6]] }
  0x4d   :  { %s135_s0 = sshll.u32 %s125_s20, 4  ;;  %s136_s0 = int_to_ptr.hbm [resolvable:$true] %s135_s0 }
  0x4e   :  { %s865_s24 = sshra.s32 %s136_s0, 4  ;;  %s866_s24 = int_to_ptr.hbm [resolvable:$true] %s865_s24 }
  0x4f   :  { %s867_s2 = scalar_lea.hbm %s866_s24, 1  ;;  %p870_p5 = scmp.lt.s32.totalorder %s866_s24, %s1520_s1 }
  0x50   :  { %p868_p4 = scmp.ne.s32.totalorder %s866_s24, %s867_s2  ;;  %p871_p6 = scmp.lt.s32.totalorder %s1285_s14, %s867_s2 }
  0x52   :  { %p872_p7 = por %p871_p6, %p870_p5 }
  0x54   :  { %p873_p8 = pnand %p872_p7, %p868_p4 }
  0x56   :  { %876 = shalt.err (!%p873_p8)  }
  0x57   :  { %140 = dma.hbm_to_vmem [thread:$0]  %s136_s0, 16, %s138_s12, [#allocation3 + $0x4] }
  0x58   :  { %s1540_s17 = smov (!%p599_p3, %s144_s17), 255  ;;  %s1353_s4 = sld [smem:[#allocation5 + $0x7]] }
  0x59   :  { %s147_s6 = scalar_lea.hbm %s1520_s1, %s1540_s17  ;;  %s1223_s8 = smov [#allocation2 + $0x6]  }
  0x5a   :  { %s157_s7 = sshll.u32 %s147_s6, 4  ;;  %s1359_s9 = sshll.u32 %s1223_s8, 4  ;;  %s158_s7 = int_to_ptr.hbm [resolvable:$true] %s157_s7  ;;  %s182_s9 = int_to_ptr.vmem [resolvable:$true] %s1359_s9 }
  0x5b   :  { %p165_p9 = scmp.gt.s32.totalorder %s1345_s23, 0  ;;  %s889_s10 = sshra.s32 %s158_s7, 4  ;;  %s890_s10 = int_to_ptr.hbm [resolvable:$true] %s889_s10 }
  0x5c   :  { %s891_s26 = scalar_lea.hbm %s890_s10, 1  ;;  %p894_p11 = scmp.lt.s32.totalorder %s890_s10, %s1520_s1 }
  0x5d   :  { %p892_p10 = scmp.ne.s32.totalorder %s890_s10, %s891_s26  ;;  %p895_p12 = scmp.lt.s32.totalorder %s1285_s14, %s891_s26 }
  0x5f   :  { %p896_p13 = por %p895_p12, %p894_p11 }
  0x61   :  { %p897_p0 = pnand %p896_p13, %p892_p10 }
  0x63   :  { %900 = shalt.err (!%p897_p0)  }
  0x64   :  { %162 = dma.hbm_to_vmem [thread:$0]  %s158_s7, 16, %s160_s22, [#allocation3 + $0x5] }
  0x65   :  { %s166_s13 = scalar_select %p165_p9, %s1345_s23, 0 }
  0x66   :  { %p605_p1 = scmp.lt.s32.totalorder %s1345_s23, 255  ;;  %p187_p2 = scmp.gt.s32.totalorder %s1353_s4, 0 }
  0x67   :  { %p611_p3 = scmp.lt.s32.totalorder %s1353_s4, 255  ;;  %s1224_s18 = smov [#allocation2 + $0x7]  }
  0x68   :  { %s1542_s13 = smov (!%p605_p1, %s166_s13), 255  ;;  %s1375_s19 = sshll.u32 %s1224_s18, 4  ;;  %s204_s19 = int_to_ptr.vmem [resolvable:$true] %s1375_s19 }
  0x69   :  { %s188_s15 = scalar_select %p187_p2, %s1353_s4, 0 }
  0x6a   :  { %s169_s16 = scalar_lea.hbm %s1520_s1, %s1542_s13  ;;  %s1377_s20 = sld [smem:[#allocation5 + $0x8]] }
  0x6b   :  { %s179_s17 = sshll.u32 %s169_s16, 4  ;;  %s180_s17 = int_to_ptr.hbm [resolvable:$true] %s179_s17 }
  0x6c   :  { %s913_s0 = sshra.s32 %s180_s17, 4  ;;  %s914_s0 = int_to_ptr.hbm [resolvable:$true] %s913_s0 }
  0x6d   :  { %s915_s21 = scalar_lea.hbm %s914_s0, 1  ;;  %p918_p5 = scmp.lt.s32.totalorder %s914_s0, %s1520_s1 }
  0x6e   :  { %p916_p4 = scmp.ne.s32.totalorder %s914_s0, %s915_s21  ;;  %p919_p6 = scmp.lt.s32.totalorder %s1285_s14, %s915_s21 }
  0x70   :  { %p920_p7 = por %p919_p6, %p918_p5 }
  0x72   :  { %p921_p8 = pnand %p920_p7, %p916_p4 }
  0x74   :  { %924 = shalt.err (!%p921_p8)  }
  0x75   :  { %184 = dma.hbm_to_vmem [thread:$0]  %s180_s17, 16, %s182_s9, [#allocation3 + $0x6] }
  0x76   :  { %s1544_s15 = smov (!%p611_p3, %s188_s15), 255  ;;  %s1385_s24 = sld [smem:[#allocation5 + $0x9]] }
  0x77   :  { %s191_s30 = scalar_lea.hbm %s1520_s1, %s1544_s15  ;;  %s1225_s5 = smov [#allocation2 + $0x8]  }
  0x78   :  { %s201_s25 = sshll.u32 %s191_s30, 4  ;;  %s1391_s6 = sshll.u32 %s1225_s5, 4  ;;  %s202_s25 = int_to_ptr.hbm [resolvable:$true] %s201_s25  ;;  %s226_s6 = int_to_ptr.vmem [resolvable:$true] %s1391_s6 }
  0x79   :  { %p209_p9 = scmp.gt.s32.totalorder %s1377_s20, 0  ;;  %s937_s7 = sshra.s32 %s202_s25, 4  ;;  %s938_s7 = int_to_ptr.hbm [resolvable:$true] %s937_s7 }
  0x7a   :  { %s939_s4 = scalar_lea.hbm %s938_s7, 1  ;;  %p942_p11 = scmp.lt.s32.totalorder %s938_s7, %s1520_s1 }
  0x7b   :  { %p940_p10 = scmp.ne.s32.totalorder %s938_s7, %s939_s4  ;;  %p943_p12 = scmp.lt.s32.totalorder %s1285_s14, %s939_s4 }
  0x7d   :  { %p944_p13 = por %p943_p12, %p942_p11 }
  0x7f   :  { %p945_p0 = pnand %p944_p13, %p940_p10 }
  0x81   :  { %948 = shalt.err (!%p945_p0)  }
  0x82   :  { %206 = dma.hbm_to_vmem [thread:$0]  %s202_s25, 16, %s204_s19, [#allocation3 + $0x7] }
  0x83   :  { %s210_s10 = scalar_select %p209_p9, %s1377_s20, 0 }
  0x84   :  { %p617_p1 = scmp.lt.s32.totalorder %s1377_s20, 255  ;;  %p231_p2 = scmp.gt.s32.totalorder %s1385_s24, 0 }
  0x85   :  { %p623_p3 = scmp.lt.s32.totalorder %s1385_s24, 255  ;;  %s1226_s27 = smov [#allocation2 + $0x9]  }
  0x86   :  { %s1546_s10 = smov (!%p617_p1, %s210_s10), 255  ;;  %s1407_s28 = sshll.u32 %s1226_s27, 4  ;;  %s248_s28 = int_to_ptr.vmem [resolvable:$true] %s1407_s28 }
  0x87   :  { %s232_s26 = scalar_select %p231_p2, %s1385_s24, 0 }
  0x88   :  { %s213_s13 = scalar_lea.hbm %s1520_s1, %s1546_s10  ;;  %s1409_s16 = sld [smem:[#allocation5 + $0xa]] }
  0x89   :  { %s223_s15 = sshll.u32 %s213_s13, 4  ;;  %s224_s15 = int_to_ptr.hbm [resolvable:$true] %s223_s15 }
  0x8a   :  { %s961_s17 = sshra.s32 %s224_s15, 4  ;;  %s962_s17 = int_to_ptr.hbm [resolvable:$true] %s961_s17 }
  0x8b   :  { %s963_s18 = scalar_lea.hbm %s962_s17, 1  ;;  %p966_p5 = scmp.lt.s32.totalorder %s962_s17, %s1520_s1 }
  0x8c   :  { %p964_p4 = scmp.ne.s32.totalorder %s962_s17, %s963_s18  ;;  %p967_p6 = scmp.lt.s32.totalorder %s1285_s14, %s963_s18 }
  0x8e   :  { %p968_p7 = por %p967_p6, %p966_p5 }
  0x90   :  { %p969_p8 = pnand %p968_p7, %p964_p4 }
  0x92   :  { %972 = shalt.err (!%p969_p8)  }
  0x93   :  { %228 = dma.hbm_to_vmem [thread:$0]  %s224_s15, 16, %s226_s6, [#allocation3 + $0x8] }
  0x94   :  { %s1548_s26 = smov (!%p623_p3, %s232_s26), 255  ;;  %s1417_s0 = sld [smem:[#allocation5 + $0xb]] }
  0x95   :  { %s235_s23 = scalar_lea.hbm %s1520_s1, %s1548_s26  ;;  %s1227_s29 = smov [#allocation2 + $0xa]  }
  0x96   :  { %s245_s2 = sshll.u32 %s235_s23, 4  ;;  %s1423_s30 = sshll.u32 %s1227_s29, 4  ;;  %s246_s2 = int_to_ptr.hbm [resolvable:$true] %s245_s2  ;;  %s270_s30 = int_to_ptr.vmem [resolvable:$true] %s1423_s30 }
  0x97   :  { %p253_p9 = scmp.gt.s32.totalorder %s1409_s16, 0  ;;  %s985_s25 = sshra.s32 %s246_s2, 4  ;;  %s986_s25 = int_to_ptr.hbm [resolvable:$true] %s985_s25 }
  0x98   :  { %s987_s24 = scalar_lea.hbm %s986_s25, 1  ;;  %p990_p11 = scmp.lt.s32.totalorder %s986_s25, %s1520_s1 }
  0x99   :  { %p988_p10 = scmp.ne.s32.totalorder %s986_s25, %s987_s24  ;;  %p991_p12 = scmp.lt.s32.totalorder %s1285_s14, %s987_s24 }
  0x9b   :  { %p992_p13 = por %p991_p12, %p990_p11 }
  0x9d   :  { %p993_p0 = pnand %p992_p13, %p988_p10 }
  0x9f   :  { %996 = shalt.err (!%p993_p0)  }
  0xa0   :  { %250 = dma.hbm_to_vmem [thread:$0]  %s246_s2, 16, %s248_s28, [#allocation3 + $0x9] }
  0xa1   :  { %s254_s7 = scalar_select %p253_p9, %s1409_s16, 0 }
  0xa2   :  { %p629_p1 = scmp.lt.s32.totalorder %s1409_s16, 255  ;;  %p275_p2 = scmp.gt.s32.totalorder %s1417_s0, 0 }
  0xa3   :  { %p635_p3 = scmp.lt.s32.totalorder %s1417_s0, 255  ;;  %s1228_s11 = smov [#allocation2 + $0xb]  }
  0xa4   :  { %s1550_s7 = smov (!%p629_p1, %s254_s7), 255  ;;  %s1439_s12 = sshll.u32 %s1228_s11, 4  ;;  %s292_s12 = int_to_ptr.vmem [resolvable:$true] %s1439_s12 }
  0xa5   :  { %s276_s4 = scalar_select %p275_p2, %s1417_s0, 0 }
  0xa6   :  { %s257_s10 = scalar_lea.hbm %s1520_s1, %s1550_s7  ;;  %s1441_s13 = sld [smem:[#allocation5 + $0xc]] }
  0xa7   :  { %s267_s26 = sshll.u32 %s257_s10, 4  ;;  %s268_s26 = int_to_ptr.hbm [resolvable:$true] %s267_s26 }
  0xa8   :  { %s1009_s15 = sshra.s32 %s268_s26, 4  ;;  %s1010_s15 = int_to_ptr.hbm [resolvable:$true] %s1009_s15 }
  0xa9   :  { %s1011_s27 = scalar_lea.hbm %s1010_s15, 1  ;;  %p1014_p5 = scmp.lt.s32.totalorder %s1010_s15, %s1520_s1 }
  0xaa   :  { %p1012_p4 = scmp.ne.s32.totalorder %s1010_s15, %s1011_s27  ;;  %p1015_p6 = scmp.lt.s32.totalorder %s1285_s14, %s1011_s27 }
  0xac   :  { %p1016_p7 = por %p1015_p6, %p1014_p5 }
  0xae   :  { %p1017_p8 = pnand %p1016_p7, %p1012_p4 }
  0xb0   :  { %1020 = shalt.err (!%p1017_p8)  }
  0xb1   :  { %272 = dma.hbm_to_vmem [thread:$0]  %s268_s26, 16, %s270_s30, [#allocation3 + $0xa] }
  0xb2   :  { %s1552_s4 = smov (!%p635_p3, %s276_s4), 255  ;;  %s1449_s17 = sld [smem:[#allocation5 + $0xd]] }
  0xb3   :  { %s279_s20 = scalar_lea.hbm %s1520_s1, %s1552_s4  ;;  %s1229_s22 = smov [#allocation2 + $0xc]  }
  0xb4   :  { %s289_s21 = sshll.u32 %s279_s20, 4  ;;  %s1455_s23 = sshll.u32 %s1229_s22, 4  ;;  %s290_s21 = int_to_ptr.hbm [resolvable:$true] %s289_s21  ;;  %s314_s23 = int_to_ptr.vmem [resolvable:$true] %s1455_s23 }
  0xb5   :  { %p297_p9 = scmp.gt.s32.totalorder %s1441_s13, 0  ;;  %s1033_s2 = sshra.s32 %s290_s21, 4  ;;  %s1034_s2 = int_to_ptr.hbm [resolvable:$true] %s1033_s2 }
  0xb6   :  { %s1035_s0 = scalar_lea.hbm %s1034_s2, 1  ;;  %p1038_p11 = scmp.lt.s32.totalorder %s1034_s2, %s1520_s1 }
  0xb7   :  { %p1036_p10 = scmp.ne.s32.totalorder %s1034_s2, %s1035_s0  ;;  %p1039_p12 = scmp.lt.s32.totalorder %s1285_s14, %s1035_s0 }
  0xb9   :  { %p1040_p13 = por %p1039_p12, %p1038_p11 }
  0xbb   :  { %p1041_p0 = pnand %p1040_p13, %p1036_p10 }
  0xbd   :  { %1044 = shalt.err (!%p1041_p0)  }
  0xbe   :  { %294 = dma.hbm_to_vmem [thread:$0]  %s290_s21, 16, %s292_s12, [#allocation3 + $0xb] }
  0xbf   :  { %s298_s25 = scalar_select %p297_p9, %s1441_s13, 0 }
  0xc0   :  { %p641_p1 = scmp.lt.s32.totalorder %s1441_s13, 255  ;;  %p319_p2 = scmp.gt.s32.totalorder %s1449_s17, 0 }
  0xc1   :  { %p647_p3 = scmp.lt.s32.totalorder %s1449_s17, 255  ;;  %s1230_s8 = smov [#allocation2 + $0xd]  }
  0xc2   :  { %s1554_s25 = smov (!%p641_p1, %s298_s25), 255  ;;  %s1471_s9 = sshll.u32 %s1230_s8, 4  ;;  %s336_s9 = int_to_ptr.vmem [resolvable:$true] %s1471_s9 }
  0xc3   :  { %s320_s24 = scalar_select %p319_p2, %s1449_s17, 0 }
  0xc4   :  { %s301_s7 = scalar_lea.hbm %s1520_s1, %s1554_s25  ;;  %s1473_s10 = sld [smem:[#allocation5 + $0xe]] }
  0xc5   :  { %s311_s4 = sshll.u32 %s301_s7, 4  ;;  %s312_s4 = int_to_ptr.hbm [resolvable:$true] %s311_s4 }
  0xc6   :  { %s1057_s26 = sshra.s32 %s312_s4, 4  ;;  %s1058_s26 = int_to_ptr.hbm [resolvable:$true] %s1057_s26 }
  0xc7   :  { %s1059_s11 = scalar_lea.hbm %s1058_s26, 1  ;;  %p1062_p5 = scmp.lt.s32.totalorder %s1058_s26, %s1520_s1 }
  0xc8   :  { %p1060_p4 = scmp.ne.s32.totalorder %s1058_s26, %s1059_s11  ;;  %p1063_p6 = scmp.lt.s32.totalorder %s1285_s14, %s1059_s11 }
  0xca   :  { %p1064_p7 = por %p1063_p6, %p1062_p5 }
  0xcc   :  { %p1065_p8 = pnand %p1064_p7, %p1060_p4 }
  0xce   :  { %1068 = shalt.err (!%p1065_p8)  }
  0xcf   :  { %316 = dma.hbm_to_vmem [thread:$0]  %s312_s4, 16, %s314_s23, [#allocation3 + $0xc] }
  0xd0   :  { %s1556_s24 = smov (!%p647_p3, %s320_s24), 255  ;;  %s1481_s15 = sld [smem:[#allocation5 + $0xf]] }
  0xd1   :  { %s323_s16 = scalar_lea.hbm %s1520_s1, %s1556_s24  ;;  %s1231_s19 = smov [#allocation2 + $0xe]  }
  0xd2   :  { %s333_s18 = sshll.u32 %s323_s16, 4  ;;  %s1487_s20 = sshll.u32 %s1231_s19, 4  ;;  %s334_s18 = int_to_ptr.hbm [resolvable:$true] %s333_s18  ;;  %s358_s20 = int_to_ptr.vmem [resolvable:$true] %s1487_s20 }
  0xd3   :  { %p341_p9 = scmp.gt.s32.totalorder %s1473_s10, 0  ;;  %s1081_s21 = sshra.s32 %s334_s18, 4  ;;  %s1082_s21 = int_to_ptr.hbm [resolvable:$true] %s1081_s21 }
  0xd4   :  { %s1083_s17 = scalar_lea.hbm %s1082_s21, 1  ;;  %p1086_p11 = scmp.lt.s32.totalorder %s1082_s21, %s1520_s1 }
  0xd5   :  { %p1084_p10 = scmp.ne.s32.totalorder %s1082_s21, %s1083_s17  ;;  %p1087_p12 = scmp.lt.s32.totalorder %s1285_s14, %s1083_s17 }
  0xd7   :  { %p1088_p13 = por %p1087_p12, %p1086_p11 }
  0xd9   :  { %p1089_p0 = pnand %p1088_p13, %p1084_p10 }
  0xdb   :  { %1092 = shalt.err (!%p1089_p0)  }
  0xdc   :  { %338 = dma.hbm_to_vmem [thread:$0]  %s334_s18, 16, %s336_s9, [#allocation3 + $0xd] }
  0xdd   :  { %s342_s2 = scalar_select %p341_p9, %s1473_s10, 0 }
  0xde   :  { %p653_p1 = scmp.lt.s32.totalorder %s1473_s10, 255  ;;  %p363_p2 = scmp.gt.s32.totalorder %s1481_s15, 0 }
  0xdf   :  { %p659_p3 = scmp.lt.s32.totalorder %s1481_s15, 255  ;;  %s1232_s5 = smov [#allocation2 + $0xf]  }
  0xe0   :  { %s1558_s2 = smov (!%p653_p1, %s342_s2), 255  ;;  %s379_s6 = sshll.u32 %s1232_s5, 4  ;;  %s380_s6 = int_to_ptr.vmem [resolvable:$true] %s379_s6 }
  0xe1   :  { %s364_s0 = scalar_select %p363_p2, %s1481_s15, 0 }
  0xe2   :  { %s345_s25 = scalar_lea.hbm %s1520_s1, %s1558_s2 }
  0xe3   :  { %s355_s24 = sshll.u32 %s345_s25, 4  ;;  %s356_s24 = int_to_ptr.hbm [resolvable:$true] %s355_s24 }
  0xe4   :  { %s1105_s7 = sshra.s32 %s356_s24, 4  ;;  %s1106_s7 = int_to_ptr.hbm [resolvable:$true] %s1105_s7 }
  0xe5   :  { %s1107_s4 = scalar_lea.hbm %s1106_s7, 1  ;;  %p1110_p5 = scmp.lt.s32.totalorder %s1106_s7, %s1520_s1 }
  0xe6   :  { %p1108_p4 = scmp.ne.s32.totalorder %s1106_s7, %s1107_s4  ;;  %p1111_p6 = scmp.lt.s32.totalorder %s1285_s14, %s1107_s4 }
  0xe8   :  { %p1112_p7 = por %p1111_p6, %p1110_p5 }
  0xea   :  { %p1113_p8 = pnand %p1112_p7, %p1108_p4 }
  0xec   :  { %1116 = shalt.err (!%p1113_p8)  }
  0xed   :  { %360 = dma.hbm_to_vmem [thread:$0]  %s356_s24, 16, %s358_s20, [#allocation3 + $0xe] }
  0xee   :  { %s1560_s0 = smov (!%p659_p3, %s364_s0), 255 }
  0xef   :  { %s367_s11 = scalar_lea.hbm %s1520_s1, %s1560_s0 }
  0xf0   :  { %s377_s12 = sshll.u32 %s367_s11, 4  ;;  %s378_s12 = int_to_ptr.hbm [resolvable:$true] %s377_s12 }
  0xf1   :  { %s1129_s13 = sshra.s32 %s378_s12, 4  ;;  %s1130_s13 = int_to_ptr.hbm [resolvable:$true] %s1129_s13 }
  0xf2   :  { %s1131_s27 = scalar_lea.hbm %s1130_s13, 1  ;;  %p1134_p10 = scmp.lt.s32.totalorder %s1130_s13, %s1520_s1 }
  0xf3   :  { %p1132_p9 = scmp.ne.s32.totalorder %s1130_s13, %s1131_s27  ;;  %p1135_p11 = scmp.lt.s32.totalorder %s1285_s14, %s1131_s27 }
  0xf5   :  { %p1136_p12 = por %p1135_p11, %p1134_p10 }
  0xf7   :  { %p1137_p13 = pnand %p1136_p12, %p1132_p9 }
  0xf9   :  { %1140 = shalt.err (!%p1137_p13)  }
  0xfa   :  { %382 = dma.hbm_to_vmem [thread:$0]  %s378_s12, 16, %s380_s6, [#allocation3 + $0xf] }
  0xfb   :  { %1181 = dma.done.wait [#allocation3], 16 }
  0xfc   :  { %1182 = vsyncadd [#allocation3], 4294967280 }
  0xfd   :  { %1183 = dma.done.wait [#allocation3 + $0x1], 16 }
  0xfe   :  { %1184 = vsyncadd [#allocation3 + $0x1], 4294967280 }
  0xff   :  { %1185 = dma.done.wait [#allocation3 + $0x2], 16 }
 0x100   :  { %1186 = vsyncadd [#allocation3 + $0x2], 4294967280 }
 0x101   :  { %1187 = dma.done.wait [#allocation3 + $0x3], 16 }
 0x102   :  { %1188 = vsyncadd [#allocation3 + $0x3], 4294967280 }
 0x103   :  { %1189 = dma.done.wait [#allocation3 + $0x4], 16 }
 0x104   :  { %1190 = vsyncadd [#allocation3 + $0x4], 4294967280 }
 0x105   :  { %1191 = dma.done.wait [#allocation3 + $0x5], 16 }
 0x106   :  { %1192 = vsyncadd [#allocation3 + $0x5], 4294967280 }
 0x107   :  { %1193 = dma.done.wait [#allocation3 + $0x6], 16 }
 0x108   :  { %1194 = vsyncadd [#allocation3 + $0x6], 4294967280 }
 0x109   :  { %1195 = dma.done.wait [#allocation3 + $0x7], 16 }
 0x10a   :  { %1196 = vsyncadd [#allocation3 + $0x7], 4294967280 }
 0x10b   :  { %1197 = dma.done.wait [#allocation3 + $0x8], 16 }
 0x10c   :  { %1198 = vsyncadd [#allocation3 + $0x8], 4294967280 }
 0x10d   :  { %1199 = dma.done.wait [#allocation3 + $0x9], 16 }
 0x10e   :  { %1200 = vsyncadd [#allocation3 + $0x9], 4294967280 }
 0x10f   :  { %1201 = dma.done.wait [#allocation3 + $0xa], 16 }
 0x110   :  { %1202 = vsyncadd [#allocation3 + $0xa], 4294967280 }
 0x111   :  { %1203 = dma.done.wait [#allocation3 + $0xb], 16 }
 0x112   :  { %1204 = vsyncadd [#allocation3 + $0xb], 4294967280 }
 0x113   :  { %1205 = dma.done.wait [#allocation3 + $0xc], 16 }
 0x114   :  { %1206 = vsyncadd [#allocation3 + $0xc], 4294967280 }
 0x115   :  { %1207 = dma.done.wait [#allocation3 + $0xd], 16 }
 0x116   :  { %1208 = vsyncadd [#allocation3 + $0xd], 4294967280 }
 0x117   :  { %1209 = dma.done.wait [#allocation3 + $0xe], 16 }
 0x118   :  { %1210 = vsyncadd [#allocation3 + $0xe], 4294967280 }
 0x119   :  { %1211 = dma.done.wait [#allocation3 + $0xf], 16 }
 0x11a   :  { %1212 = vsyncadd [#allocation3 + $0xf], 4294967280  ;;  %s1233_s1 = smov [#allocation9]   ;;  %s429_s19 = sshll.u32 %s1522_s3, 4  ;;  %v416_v0 = vld [vmem:[#allocation2] sm:$0xff]  ;;  %v418_v1 = vld [vmem:[#allocation6] sm:$0xff]  ;;  %s430_s19 = int_to_ptr.hbm [resolvable:$true] %s429_s19 }
 0x11b   :  { %s427_s14 = sshll.u32 %s1233_s1, 4  ;;  %v417_v2 = vld [vmem:[#allocation2 + $0x8] sm:$0xff]  ;;  %v419_v3 = vadd.f32 %v418_v1, %v416_v0  ;;  %s1234_s20 = smov 128   ;;  %s428_s14 = int_to_ptr.vmem [resolvable:$true] %s427_s14 }
 0x11c   :  { %v420_v4 = vadd.f32 %v418_v1, %v417_v2  ;;  %s1235_s21 = smov 8  }
 0x11d   :  { %421 = vst [vmem:[#allocation9] sm:$0xff] %v419_v3 }
 0x11e   :  { %422 = vst [vmem:[#allocation9 + $0x8] sm:$0xff] %v420_v4 }
 0x11f   :  { %435 = dma.vmem_to_hbm [thread:$0]  %s428_s14, 256, %s430_s19, [#allocation8], %s1234_s20, %s1234_s20, %s1235_s21  }
 0x120   :  { %1213 = dma.done.wait [#allocation8], 256  }
 0x121   :  { %1214 = vsyncadd [#allocation8], 4294967040 }
 0x122   :  { %440 = vsyncpa [#allocation7], 1 }
 0x123   :  { %441 = vsyncpa [#allocation8], 1 }
 0x124   :  { %442 = vsyncmov [#allocation3] }
 0x127   :  { %s443_s17 = vpop.sfrf %442 }
 0x128   :  { %p664_p0 = scmp.ne.s32.totalorder %s443_s17, 0 }
 0x12a   :  { %447 = shalt.err (%p664_p0)  }
 0x12b   :  { %449 = vsyncmov [#allocation3 + $0x1] }
 0x12e   :  { %s450_s3 = vpop.sfrf %449 }
 0x12f   :  { %p665_p1 = scmp.ne.s32.totalorder %s450_s3, 0 }
 0x131   :  { %454 = shalt.err (%p665_p1)  }
 0x132   :  { %456 = vsyncmov [#allocation3 + $0x2] }
 0x135   :  { %s457_s22 = vpop.sfrf %456 }
 0x136   :  { %p666_p2 = scmp.ne.s32.totalorder %s457_s22, 0 }
 0x138   :  { %461 = shalt.err (%p666_p2)  }
 0x139   :  { %463 = vsyncmov [#allocation3 + $0x3] }
 0x13c   :  { %s464_s23 = vpop.sfrf %463 }
 0x13d   :  { %p667_p3 = scmp.ne.s32.totalorder %s464_s23, 0 }
 0x13f   :  { %468 = shalt.err (%p667_p3)  }
 0x140   :  { %470 = vsyncmov [#allocation3 + $0x4] }
 0x143   :  { %s471_s2 = vpop.sfrf %470 }
 0x144   :  { %p668_p4 = scmp.ne.s32.totalorder %s471_s2, 0 }
 0x146   :  { %475 = shalt.err (%p668_p4)  }
 0x147   :  { %477 = vsyncmov [#allocation3 + $0x5] }
 0x14a   :  { %s478_s0 = vpop.sfrf %477 }
 0x14b   :  { %p669_p5 = scmp.ne.s32.totalorder %s478_s0, 0 }
 0x14d   :  { %482 = shalt.err (%p669_p5)  }
 0x14e   :  { %484 = vsyncmov [#allocation3 + $0x6] }
 0x151   :  { %s485_s29 = vpop.sfrf %484 }
 0x152   :  { %p670_p6 = scmp.ne.s32.totalorder %s485_s29, 0 }
 0x154   :  { %489 = shalt.err (%p670_p6)  }
 0x155   :  { %491 = vsyncmov [#allocation3 + $0x7] }
 0x158   :  { %s492_s30 = vpop.sfrf %491 }
 0x159   :  { %p671_p7 = scmp.ne.s32.totalorder %s492_s30, 0 }
 0x15b   :  { %496 = shalt.err (%p671_p7)  }
 0x15c   :  { %498 = vsyncmov [#allocation3 + $0x8] }
 0x15f   :  { %s499_s25 = vpop.sfrf %498 }
 0x160   :  { %p672_p8 = scmp.ne.s32.totalorder %s499_s25, 0 }
 0x162   :  { %503 = shalt.err (%p672_p8)  }
 0x163   :  { %505 = vsyncmov [#allocation3 + $0x9] }
 0x166   :  { %s506_s24 = vpop.sfrf %505 }
 0x167   :  { %p673_p9 = scmp.ne.s32.totalorder %s506_s24, 0 }
 0x169   :  { %510 = shalt.err (%p673_p9)  }
 0x16a   :  { %512 = vsyncmov [#allocation3 + $0xa] }
 0x16d   :  { %s513_s5 = vpop.sfrf %512 }
 0x16e   :  { %p674_p10 = scmp.ne.s32.totalorder %s513_s5, 0 }
 0x170   :  { %517 = shalt.err (%p674_p10)  }
 0x171   :  { %519 = vsyncmov [#allocation3 + $0xb] }
 0x174   :  { %s520_s6 = vpop.sfrf %519 }
 0x175   :  { %p675_p11 = scmp.ne.s32.totalorder %s520_s6, 0 }
 0x177   :  { %524 = shalt.err (%p675_p11)  }
 0x178   :  { %526 = vsyncmov [#allocation3 + $0xc] }
 0x17b   :  { %s527_s7 = vpop.sfrf %526 }
 0x17c   :  { %p676_p12 = scmp.ne.s32.totalorder %s527_s7, 0 }
 0x17e   :  { %531 = shalt.err (%p676_p12)  }
 0x17f   :  { %533 = vsyncmov [#allocation3 + $0xd] }
 0x182   :  { %s534_s4 = vpop.sfrf %533 }
 0x183   :  { %p677_p13 = scmp.ne.s32.totalorder %s534_s4, 0 }
 0x185   :  { %538 = shalt.err (%p677_p13)  }
 0x186   :  { %540 = vsyncmov [#allocation3 + $0xe] }
 0x189   :  { %s541_s8 = vpop.sfrf %540 }
 0x18a   :  { %p678_p0 = scmp.ne.s32.totalorder %s541_s8, 0 }
 0x18c   :  { %545 = shalt.err (%p678_p0)  }
 0x18d   :  { %547 = vsyncmov [#allocation3 + $0xf] }
 0x190   :  { %s548_s9 = vpop.sfrf %547 }
 0x191   :  { %p679_p1 = scmp.ne.s32.totalorder %s548_s9, 0 }
 0x193   :  { %552 = shalt.err (%p679_p1)  }

</bundles_post_ra>
